<compile_context>
chip_gen: v7x
topology: tpu7x:2x2x1
jax: 0.10.0
libtpu: 0.0.40
codegen_flags: <defaults>
</compile_context>

<pallas_src>
import functools
import math

import jax
import jax.numpy as jnp
from jax import lax
from jax.experimental import pallas as pl
from jax.experimental.pallas import tpu as pltpu

# ----------------------- small, BERT-shaped config -----------------------
B = 2            # batch
S = 16           # sequence length
H = 128          # hidden size ("output_dim" of word embeddings)
NUM_HEADS = 4
HEAD_DIM = H // NUM_HEADS
FFN = 256        # intermediate size
NUM_LAYERS = 2
VOCAB = 64
NUM_TAGS = 9     # len(['B-PER','I-PER','B-LOC','I-LOC','B-ORG','I-ORG','B-MISC','I-MISC','O'])
TAG_PAD = 128    # lane-dense padded tagger output width
LN_EPS = 1e-12   # HF BERT layer-norm eps

WBIG_W = 3 * H + H + FFN + TAG_PAD          # [wqkv | wo | w1 | tag_w] = 896 lanes
NSMALL = 9 * H + FFN + TAG_PAD              # [bqkv|bo|ln1g|ln1b|b1|b2|ln2g|ln2b|tagb] = 1536 lanes


def _layer_norm(x, g, b):
    mu = jnp.mean(x, axis=-1, keepdims=True)
    var = jnp.mean(jnp.square(x - mu), axis=-1, keepdims=True)
    return (x - mu) * lax.rsqrt(var + LN_EPS) * g + b


# ----------------------- per-layer (grid-streamed) encoder + tagger kernel -----------------------
def bert_layer_kernel(x_ref, bias_ref, wbig_ref, w2_ref, sm_ref,
                      logits_ref, x_sc, *, num_heads):
    layer = pl.program_id(0)

    @pl.when(layer == 0)
    def _():
        x_sc[...] = x_ref[...]                       # load embeddings into the carry

    x = x_sc[...]                                    # (BS, H) f32
    bs, h = x.shape
    hd = h // num_heads
    ffn = w2_ref.shape[0]

    # static lane offsets into the packed weight array  [wqkv | wo | w1 | tag_w]
    o_wo, o_w1, o_tag = 3 * h, 4 * h, 4 * h + ffn
    # static lane offsets into the packed small-param array
    o_bo, o_g1, o_b1 = 3 * h, 4 * h, 5 * h
    o_fb1, o_fb2 = 6 * h, 6 * h + ffn
    o_g2, o_b2, o_tb = 7 * h + ffn, 8 * h + ffn, 9 * h + ffn

    # ---- fused QKV projection (attention scale pre-folded into Q weights/bias) ----
    xb = x.astype(jnp.bfloat16)
    qkv = jnp.dot(xb, wbig_ref[:, :3 * h],
                  preferred_element_type=jnp.float32) + sm_ref[:, :3 * h]
    q = qkv[:, :h].astype(jnp.bfloat16)
    k = qkv[:, h:2 * h].astype(jnp.bfloat16)
    v = qkv[:, 2 * h:3 * h].astype(jnp.bfloat16)

    # ---- all-head scores lane-packed into one (BS, NH*BS) block ----
    s_all = jnp.concatenate(
        [lax.dot_general(q[:, i * hd:(i + 1) * hd], k[:, i * hd:(i + 1) * hd],
                         (((1,), (1,)), ((), ())),
                         preferred_element_type=jnp.float32)
         for i in range(num_heads)], axis=1) + bias_ref[...]

    # ---- segmented softmax: exp runs once lane-dense, reductions are per-BS-lane groups ----
    m_b = jnp.concatenate(
        [jnp.broadcast_to(
            jnp.max(s_all[:, i * bs:(i + 1) * bs], axis=-1, keepdims=True), (bs, bs))
         for i in range(num_heads)], axis=1)
    e = jnp.exp(s_all - m_b)                                          # single EUP pass
    r_b = jnp.concatenate(
        [jnp.broadcast_to(
            pl.reciprocal(jnp.sum(e[:, i * bs:(i + 1) * bs], axis=-1, keepdims=True),
                          approx=True), (bs, bs))
         for i in range(num_heads)], axis=1)
    p = (e * r_b).astype(jnp.bfloat16)                                # (BS, NH*BS)

    # ---- per-head PV packed lane-contiguous, then ONE K=H output projection ----
    ctx = jnp.concatenate(
        [jnp.dot(p[:, i * bs:(i + 1) * bs], v[:, i * hd:(i + 1) * hd],
                 preferred_element_type=jnp.float32)
         for i in range(num_heads)], axis=1).astype(jnp.bfloat16)     # (BS, H)
    attn = jnp.dot(ctx, wbig_ref[:, o_wo:o_w1],
                   preferred_element_type=jnp.float32) + sm_ref[:, o_bo:o_g1]
    h1 = _layer_norm(x + attn, sm_ref[:, o_g1:o_b1], sm_ref[:, o_b1:o_fb1])

    # ---- FFN ----
    f = jnp.dot(h1.astype(jnp.bfloat16), wbig_ref[:, o_w1:o_tag],
                preferred_element_type=jnp.float32) + sm_ref[:, o_fb1:o_fb2]
    # TODO(synk): HF BERT uses exact erf-GELU; tanh-approximate GELU used here.
    f = jax.nn.gelu(f, approximate=True)
    y = jnp.dot(f.astype(jnp.bfloat16), w2_ref[...],
                preferred_element_type=jnp.float32) + sm_ref[:, o_fb2:o_g2]
    x_new = _layer_norm(h1 + y, sm_ref[:, o_g2:o_b2], sm_ref[:, o_b2:o_tb])

    x_sc[...] = x_new                                # carry to the next layer

    # ---- tagger head: lane-dense (BS, 128) logits, only on the last layer step ----
    @pl.when(layer == pl.num_programs(0) - 1)
    def _():
        logits_ref[...] = (jnp.dot(x_new.astype(jnp.bfloat16), wbig_ref[:, o_tag:],
                                   preferred_element_type=jnp.float32)
                           + sm_ref[:, o_tb:]).astype(logits_ref.dtype)


def fused_forward(x_flat, bias_tiled, pk):
    bs, h = x_flat.shape
    kernel = functools.partial(bert_layer_kernel, num_heads=NUM_HEADS)
    # TODO(synk): at real BERT-base shapes (H=768, FFN=3072, S=512) add a 'parallel'
    # query-row tile axis so work shards across v7x's 2 TensorCores; the layer axis
    # below already gives double-buffered per-layer weight streaming (VMEM holds at
    # most 2 layers of weights, which is what fits v7x's 64 MiB at full size).
    grid_spec = pltpu.PrefetchScalarGridSpec(
        num_scalar_prefetch=0,
        grid=(NUM_LAYERS,),
        in_specs=[
            pl.BlockSpec((bs, h), lambda l: (0, 0)),                    # x (resident)
            pl.BlockSpec(bias_tiled.shape, lambda l: (0, 0)),           # head-tiled bias (resident)
            pl.BlockSpec((None, h, WBIG_W), lambda l: (l, 0, 0)),       # packed big weights, per layer
            pl.BlockSpec((None, FFN, h), lambda l: (l, 0, 0)),          # w2, per layer
            pl.BlockSpec((None, 1, NSMALL), lambda l: (l, 0, 0)),       # packed small params, per layer
        ],
        out_specs=pl.BlockSpec((bs, TAG_PAD), lambda l: (0, 0)),
        scratch_shapes=[pltpu.VMEM((bs, h), jnp.float32)],              # hidden-state carry
    )
    return pl.pallas_call(
        kernel,
        out_shape=jax.ShapeDtypeStruct((bs, TAG_PAD), jnp.float32),
        grid_spec=grid_spec,
        compiler_params=pltpu.CompilerParams(
            dimension_semantics=("arbitrary",),
            vmem_limit_bytes=64 * 1024 * 1024),
    )(x_flat, bias_tiled, pk["wbig"], pk["w2"], pk["smalls"])


# ----------------------- parameters (deterministic synthetic init) -----------------------
def init_params(key):
    keys = iter(jax.random.split(key, 256))

    def nrm(shape, std=0.02):
        return jax.random.normal(next(keys), shape, jnp.float32) * std

    def zeros(shape):
        return jnp.zeros(shape, jnp.float32)

    def ones(shape):
        return jnp.ones(shape, jnp.float32)

    layers = []
    for _ in range(NUM_LAYERS):
        layers.append(dict(
            wq=nrm((H, H)), bq=zeros((1, H)),
            wk=nrm((H, H)), bk=zeros((1, H)),
            wv=nrm((H, H)), bv=zeros((1, H)),
            wo=nrm((H, H)), bo=zeros((1, H)),
            ln1g=ones((1, H)), ln1b=zeros((1, H)),
            w1=nrm((H, FFN)), b1=zeros((1, FFN)),
            w2=nrm((FFN, H)), b2=zeros((1, H)),
            ln2g=ones((1, H)), ln2b=zeros((1, H)),
        ))
    return dict(
        word_emb=nrm((VOCAB, H)),
        pos_emb=nrm((S, H)),
        type_emb=nrm((2, H)),
        emb_ln_g=ones((H,)), emb_ln_b=zeros((H,)),
        layers=layers,
        tag_w=nrm((H, NUM_TAGS)),          # (in, out) == torch Linear.weight.T
        tag_b=zeros((1, NUM_TAGS)),
    )


def pack_params(params):
    """Host-side, done ONCE: fuse QKV, fold the attention scale into Q, pad the tagger to
    128 lanes, lane-concatenate all per-layer weights / small params, cast matmul weights
    to bf16, and stack along a layer axis for the layer-grid BlockSpecs."""
    Ls = params["layers"]
    scale = 1.0 / math.sqrt(HEAD_DIM)
    tag_w_pad = jnp.zeros((H, TAG_PAD), jnp.float32).at[:, :NUM_TAGS].set(params["tag_w"])
    tag_b_pad = jnp.zeros((1, TAG_PAD), jnp.float32).at[:, :NUM_TAGS].set(params["tag_b"])

    wbig_layers, small_layers = [], []
    for l in Ls:
        wqkv = jnp.concatenate([l["wq"] * scale, l["wk"], l["wv"]], axis=1)      # (H, 3H)
        wbig_layers.append(jnp.concatenate([wqkv, l["wo"], l["w1"], tag_w_pad], axis=1))
        bqkv = jnp.concatenate([l["bq"] * scale, l["bk"], l["bv"]], axis=1)      # (1, 3H)
        small_layers.append(jnp.concatenate(
            [bqkv, l["bo"], l["ln1g"], l["ln1b"], l["b1"], l["b2"],
             l["ln2g"], l["ln2b"], tag_b_pad], axis=1))

    return dict(
        wbig=jnp.stack(wbig_layers).astype(jnp.bfloat16),               # (L, H, 896) bf16
        w2=jnp.stack([l["w2"] for l in Ls]).astype(jnp.bfloat16),       # (L, FFN, H) bf16
        smalls=jnp.stack(small_layers)[:, None, :].reshape(NUM_LAYERS, 1, NSMALL)
        if False else jnp.stack(small_layers).reshape(NUM_LAYERS, 1, NSMALL),  # (L, 1, 1536) f32
    )


def prepare(params):
    """Cacheable prepared pytree: embedding tables + packed kernel weights."""
    return dict(
        word_emb=params["word_emb"], pos_emb=params["pos_emb"], type_emb=params["type_emb"],
        emb_ln_g=params["emb_ln_g"], emb_ln_b=params["emb_ln_b"],
        kernel=pack_params(params))


# ----------------------- BertEncoderModule.forward -----------------------
@jax.jit
def bert_encoder_module_forward(prep, token_idx_ctxt, mask_ctxt):
    b, s = token_idx_ctxt.shape
    h = prep["word_emb"].shape[1]

    # --- embeddings (glue JAX: data-dependent gather + sum + layernorm) ---
    x = jnp.take(prep["word_emb"], token_idx_ctxt, axis=0)              # (B, S, H)
    x = x + prep["pos_emb"][None, :s, :]
    x = x + prep["type_emb"][0][None, None, :]                          # token_type_ids=None -> 0
    mu = jnp.mean(x, -1, keepdims=True)
    var = jnp.mean(jnp.square(x - mu), -1, keepdims=True)
    x = (x - mu) * lax.rsqrt(var + LN_EPS) * prep["emb_ln_g"] + prep["emb_ln_b"]
    x_flat = x.reshape(b * s, h)

    # --- block-diagonal additive attention bias over the flattened (B*S) key axis,
    #     pre-tiled once per head so the kernel adds it lane-dense.
    #   same batch : HF-style (1 - mask) * -10000
    #   cross batch: -1e9 so flattened softmax == per-batch softmax (max-subtract keeps it safe)
    batch_ids = jnp.repeat(jnp.arange(b), s)
    same_batch = batch_ids[:, None] == batch_ids[None, :]
    key_bias = (1.0 - mask_ctxt.astype(jnp.float32).reshape(1, b * s)) * -10000.0
    bias_full = jnp.where(same_batch, key_bias, jnp.float32(-1e9))      # (B*S, B*S)
    bias_tiled = jnp.tile(bias_full, (1, NUM_HEADS))                    # (B*S, NH*B*S)

    logits_pad = fused_forward(x_flat, bias_tiled, prep["kernel"])      # (B*S, 128)

    ctxt_logits = logits_pad[:, :NUM_TAGS].reshape(b, s, NUM_TAGS)
    ctxt_tags = jnp.argmax(ctxt_logits, axis=2).astype(jnp.int32)       # torch returns int64
    return {"ctxt_logits": ctxt_logits, "ctxt_tags": ctxt_tags}


if __name__ == "__main__":
    key = jax.random.PRNGKey(0)
    pkey, ikey = jax.random.split(key)
    params = init_params(pkey)
    prep = prepare(params)              # packed once, reused across calls

    token_idx_ctxt = jax.random.randint(ikey, (B, S), 0, VOCAB, dtype=jnp.int32)
    # attention mask: second sequence padded after position 11
    mask_ctxt = jnp.ones((B, S), jnp.float32).at[1, 12:].set(0.0)

    outs = bert_encoder_module_forward(prep, token_idx_ctxt, mask_ctxt)
    jax.block_until_ready(outs)

    assert outs["ctxt_logits"].shape == (B, S, NUM_TAGS)
    assert outs["ctxt_tags"].shape == (B, S)
    print("KERNEL_OK")
</pallas_src>

<mosaic_0001>
module attributes {stable_mosaic.version = 11 : i64} {
  func.func @bert_layer_kernel(%arg0: i32, %arg1: memref<32x128xf32, #tpu.memory_space<vmem>>, %arg2: memref<32x128xf32, #tpu.memory_space<vmem>>, %arg3: memref<1x128x896xbf16, #tpu.memory_space<vmem>>, %arg4: memref<1x256x128xbf16, #tpu.memory_space<vmem>>, %arg5: memref<1x1x1536xf32, #tpu.memory_space<vmem>>, %arg6: memref<32x128xf32, #tpu.memory_space<vmem>>, %arg7: memref<32x128xf32, #tpu.memory_space<vmem>>) attributes {dimension_semantics = [#tpu.dimension_semantics<arbitrary>], iteration_bounds = array<i64: 2>, scalar_prefetch = 0 : i64, scratch_operands = 1 : i64, tpu.core_type = #tpu.core_type<tc>, window_params = [{pipeline_mode = #tpu.pipeline_mode<synchronous>, transform_indices = @transform_0, window_bounds = array<i64: 32, 128>}, {pipeline_mode = #tpu.pipeline_mode<synchronous>, transform_indices = @transform_1, window_bounds = array<i64: 32, 128>}, {transform_indices = @transform_2, window_bounds = array<i64: 1, 128, 896>}, {transform_indices = @transform_3, window_bounds = array<i64: 1, 256, 128>}, {transform_indices = @transform_4, window_bounds = array<i64: 1, 1, 1536>}, {pipeline_mode = #tpu.pipeline_mode<synchronous>, transform_indices = @transform_5, window_bounds = array<i64: 32, 128>}]} {
    %c0_i32 = arith.constant 0 : i32
    %0 = arith.cmpi eq, %arg0, %c0_i32 : i32
    %1 = arith.extui %0 : i1 to i32
    %c0_i32_0 = arith.constant 0 : i32
    %2 = arith.cmpi ne, %1, %c0_i32_0 : i32
    scf.if %2 {
      %c0_69 = arith.constant 0 : index
      %c0_70 = arith.constant 0 : index
      %191 = vector.load %arg1[%c0_69, %c0_70] : memref<32x128xf32, #tpu.memory_space<vmem>>, vector<32x128xf32>
      %c0_71 = arith.constant 0 : index
      %c0_72 = arith.constant 0 : index
      %192 = vector.load %arg7[%c0_71, %c0_72] : memref<32x128xf32, #tpu.memory_space<vmem>>, vector<32x128xf32>
      tpu.vector_store %arg7[%c0_71, %c0_72], %191 {strides = array<i32>} : memref<32x128xf32, #tpu.memory_space<vmem>>, vector<32x128xf32>,
    } else {
    }
    %c0 = arith.constant 0 : index
    %c0_1 = arith.constant 0 : index
    %3 = vector.load %arg7[%c0, %c0_1] : memref<32x128xf32, #tpu.memory_space<vmem>>, vector<32x128xf32>
    %4 = arith.truncf %3 : vector<32x128xf32> to vector<32x128xbf16>
    %c0_2 = arith.constant 0 : index
    %c0_3 = arith.constant 0 : index
    %c0_4 = arith.constant 0 : index
    %5 = vector.load %arg3[%c0_2, %c0_3, %c0_4] : memref<1x128x896xbf16, #tpu.memory_space<vmem>>, vector<1x128x384xbf16>
    %6 = vector.shape_cast %5 : vector<1x128x384xbf16> to vector<128x384xbf16>
    %cst = arith.constant dense<0.000000e+00> : vector<32x384xf32>
    %7 = tpu.matmul %4, %6, %cst {dimension_numbers = #tpu.dot_dimension_numbers<[1], [0], [0], [1], [0, 0, 1, 1], [], []>} : vector<32x128xbf16>, vector<128x384xbf16>, vector<32x384xf32> -> vector<32x384xf32>
    %c0_5 = arith.constant 0 : index
    %c0_6 = arith.constant 0 : index
    %c0_7 = arith.constant 0 : index
    %8 = vector.load %arg5[%c0_5, %c0_6, %c0_7] : memref<1x1x1536xf32, #tpu.memory_space<vmem>>, vector<1x1x384xf32>
    %9 = vector.shape_cast %8 : vector<1x1x384xf32> to vector<1x384xf32>
    %10 = vector.broadcast %9 : vector<1x384xf32> to vector<32x384xf32>
    %11 = arith.addf %7, %10 : vector<32x384xf32>
    %12 = vector.extract_strided_slice %11 {offsets = [0, 0], sizes = [32, 128], strides = [1, 1]} : vector<32x384xf32> to vector<32x128xf32>
    %13 = arith.truncf %12 : vector<32x128xf32> to vector<32x128xbf16>
    %14 = vector.extract_strided_slice %11 {offsets = [0, 128], sizes = [32, 128], strides = [1, 1]} : vector<32x384xf32> to vector<32x128xf32>
    %15 = arith.truncf %14 : vector<32x128xf32> to vector<32x128xbf16>
    %16 = vector.extract_strided_slice %11 {offsets = [0, 256], sizes = [32, 128], strides = [1, 1]} : vector<32x384xf32> to vector<32x128xf32>
    %17 = arith.truncf %16 : vector<32x128xf32> to vector<32x128xbf16>
    %18 = vector.extract_strided_slice %13 {offsets = [0, 0], sizes = [32, 32], strides = [1, 1]} : vector<32x128xbf16> to vector<32x32xbf16>
    %19 = vector.extract_strided_slice %15 {offsets = [0, 0], sizes = [32, 32], strides = [1, 1]} : vector<32x128xbf16> to vector<32x32xbf16>
    %cst_8 = arith.constant dense<0.000000e+00> : vector<32x32xf32>
    %20 = tpu.matmul %18, %19, %cst_8 {dimension_numbers = #tpu.dot_dimension_numbers<[1], [1], [0], [0], [0, 0, 1, 0], [], []>} : vector<32x32xbf16>, vector<32x32xbf16>, vector<32x32xf32> -> vector<32x32xf32>
    %21 = vector.extract_strided_slice %13 {offsets = [0, 32], sizes = [32, 32], strides = [1, 1]} : vector<32x128xbf16> to vector<32x32xbf16>
    %22 = vector.extract_strided_slice %15 {offsets = [0, 32], sizes = [32, 32], strides = [1, 1]} : vector<32x128xbf16> to vector<32x32xbf16>
    %cst_9 = arith.constant dense<0.000000e+00> : vector<32x32xf32>
    %23 = tpu.matmul %21, %22, %cst_9 {dimension_numbers = #tpu.dot_dimension_numbers<[1], [1], [0], [0], [0, 0, 1, 0], [], []>} : vector<32x32xbf16>, vector<32x32xbf16>, vector<32x32xf32> -> vector<32x32xf32>
    %24 = vector.extract_strided_slice %13 {offsets = [0, 64], sizes = [32, 32], strides = [1, 1]} : vector<32x128xbf16> to vector<32x32xbf16>
    %25 = vector.extract_strided_slice %15 {offsets = [0, 64], sizes = [32, 32], strides = [1, 1]} : vector<32x128xbf16> to vector<32x32xbf16>
    %cst_10 = arith.constant dense<0.000000e+00> : vector<32x32xf32>
    %26 = tpu.matmul %24, %25, %cst_10 {dimension_numbers = #tpu.dot_dimension_numbers<[1], [1], [0], [0], [0, 0, 1, 0], [], []>} : vector<32x32xbf16>, vector<32x32xbf16>, vector<32x32xf32> -> vector<32x32xf32>
    %27 = vector.extract_strided_slice %13 {offsets = [0, 96], sizes = [32, 32], strides = [1, 1]} : vector<32x128xbf16> to vector<32x32xbf16>
    %28 = vector.extract_strided_slice %15 {offsets = [0, 96], sizes = [32, 32], strides = [1, 1]} : vector<32x128xbf16> to vector<32x32xbf16>
    %cst_11 = arith.constant dense<0.000000e+00> : vector<32x32xf32>
    %29 = tpu.matmul %27, %28, %cst_11 {dimension_numbers = #tpu.dot_dimension_numbers<[1], [1], [0], [0], [0, 0, 1, 0], [], []>} : vector<32x32xbf16>, vector<32x32xbf16>, vector<32x32xf32> -> vector<32x32xf32>
    %30 = tpu.concatenate %20, %23, %26, %29 in 1 : vector<32x32xf32>, vector<32x32xf32>, vector<32x32xf32>, vector<32x32xf32> -> vector<32x128xf32>
    %c0_12 = arith.constant 0 : index
    %c0_13 = arith.constant 0 : index
    %31 = vector.load %arg2[%c0_12, %c0_13] : memref<32x128xf32, #tpu.memory_space<vmem>>, vector<32x128xf32>
    %32 = arith.addf %30, %31 : vector<32x128xf32>
    %33 = vector.extract_strided_slice %32 {offsets = [0, 0], sizes = [32, 32], strides = [1, 1]} : vector<32x128xf32> to vector<32x32xf32>
    %cst_14 = arith.constant dense<0xFF800000> : vector<32xf32>
    %34 = vector.multi_reduction <maximumf>, %33, %cst_14 [1] : vector<32x32xf32> to vector<32xf32>
    %35 = vector.shape_cast %34 : vector<32xf32> to vector<32x1xf32>
    %36 = vector.shape_cast %35 : vector<32x1xf32> to vector<32x1xf32>
    %37 = vector.broadcast %36 : vector<32x1xf32> to vector<32x32xf32>
    %38 = vector.extract_strided_slice %32 {offsets = [0, 32], sizes = [32, 32], strides = [1, 1]} : vector<32x128xf32> to vector<32x32xf32>
    %cst_15 = arith.constant dense<0xFF800000> : vector<32xf32>
    %39 = vector.multi_reduction <maximumf>, %38, %cst_15 [1] : vector<32x32xf32> to vector<32xf32>
    %40 = vector.shape_cast %39 : vector<32xf32> to vector<32x1xf32>
    %41 = vector.shape_cast %40 : vector<32x1xf32> to vector<32x1xf32>
    %42 = vector.broadcast %41 : vector<32x1xf32> to vector<32x32xf32>
    %43 = vector.extract_strided_slice %32 {offsets = [0, 64], sizes = [32, 32], strides = [1, 1]} : vector<32x128xf32> to vector<32x32xf32>
    %cst_16 = arith.constant dense<0xFF800000> : vector<32xf32>
    %44 = vector.multi_reduction <maximumf>, %43, %cst_16 [1] : vector<32x32xf32> to vector<32xf32>
    %45 = vector.shape_cast %44 : vector<32xf32> to vector<32x1xf32>
    %46 = vector.shape_cast %45 : vector<32x1xf32> to vector<32x1xf32>
    %47 = vector.broadcast %46 : vector<32x1xf32> to vector<32x32xf32>
    %48 = vector.extract_strided_slice %32 {offsets = [0, 96], sizes = [32, 32], strides = [1, 1]} : vector<32x128xf32> to vector<32x32xf32>
    %cst_17 = arith.constant dense<0xFF800000> : vector<32xf32>
    %49 = vector.multi_reduction <maximumf>, %48, %cst_17 [1] : vector<32x32xf32> to vector<32xf32>
    %50 = vector.shape_cast %49 : vector<32xf32> to vector<32x1xf32>
    %51 = vector.shape_cast %50 : vector<32x1xf32> to vector<32x1xf32>
    %52 = vector.broadcast %51 : vector<32x1xf32> to vector<32x32xf32>
    %53 = tpu.concatenate %37, %42, %47, %52 in 1 : vector<32x32xf32>, vector<32x32xf32>, vector<32x32xf32>, vector<32x32xf32> -> vector<32x128xf32>
    %54 = arith.subf %32, %53 : vector<32x128xf32>
    %55 = math.exp %54 : vector<32x128xf32>
    %56 = vector.extract_strided_slice %55 {offsets = [0, 0], sizes = [32, 32], strides = [1, 1]} : vector<32x128xf32> to vector<32x32xf32>
    %cst_18 = arith.constant dense<0.000000e+00> : vector<32xf32>
    %57 = vector.multi_reduction <add>, %56, %cst_18 [1] : vector<32x32xf32> to vector<32xf32>
    %58 = vector.shape_cast %57 : vector<32xf32> to vector<32x1xf32>
    %59 = tpu.reciprocal %58 {approx = true} : vector<32x1xf32> -> vector<32x1xf32>
    %60 = vector.shape_cast %59 : vector<32x1xf32> to vector<32x1xf32>
    %61 = vector.broadcast %60 : vector<32x1xf32> to vector<32x32xf32>
    %62 = vector.extract_strided_slice %55 {offsets = [0, 32], sizes = [32, 32], strides = [1, 1]} : vector<32x128xf32> to vector<32x32xf32>
    %cst_19 = arith.constant dense<0.000000e+00> : vector<32xf32>
    %63 = vector.multi_reduction <add>, %62, %cst_19 [1] : vector<32x32xf32> to vector<32xf32>
    %64 = vector.shape_cast %63 : vector<32xf32> to vector<32x1xf32>
    %65 = tpu.reciprocal %64 {approx = true} : vector<32x1xf32> -> vector<32x1xf32>
    %66 = vector.shape_cast %65 : vector<32x1xf32> to vector<32x1xf32>
    %67 = vector.broadcast %66 : vector<32x1xf32> to vector<32x32xf32>
    %68 = vector.extract_strided_slice %55 {offsets = [0, 64], sizes = [32, 32], strides = [1, 1]} : vector<32x128xf32> to vector<32x32xf32>
    %cst_20 = arith.constant dense<0.000000e+00> : vector<32xf32>
    %69 = vector.multi_reduction <add>, %68, %cst_20 [1] : vector<32x32xf32> to vector<32xf32>
    %70 = vector.shape_cast %69 : vector<32xf32> to vector<32x1xf32>
    %71 = tpu.reciprocal %70 {approx = true} : vector<32x1xf32> -> vector<32x1xf32>
    %72 = vector.shape_cast %71 : vector<32x1xf32> to vector<32x1xf32>
    %73 = vector.broadcast %72 : vector<32x1xf32> to vector<32x32xf32>
    %74 = vector.extract_strided_slice %55 {offsets = [0, 96], sizes = [32, 32], strides = [1, 1]} : vector<32x128xf32> to vector<32x32xf32>
    %cst_21 = arith.constant dense<0.000000e+00> : vector<32xf32>
    %75 = vector.multi_reduction <add>, %74, %cst_21 [1] : vector<32x32xf32> to vector<32xf32>
    %76 = vector.shape_cast %75 : vector<32xf32> to vector<32x1xf32>
    %77 = tpu.reciprocal %76 {approx = true} : vector<32x1xf32> -> vector<32x1xf32>
    %78 = vector.shape_cast %77 : vector<32x1xf32> to vector<32x1xf32>
    %79 = vector.broadcast %78 : vector<32x1xf32> to vector<32x32xf32>
    %80 = tpu.concatenate %61, %67, %73, %79 in 1 : vector<32x32xf32>, vector<32x32xf32>, vector<32x32xf32>, vector<32x32xf32> -> vector<32x128xf32>
    %81 = arith.mulf %55, %80 : vector<32x128xf32>
    %82 = arith.truncf %81 : vector<32x128xf32> to vector<32x128xbf16>
    %83 = vector.extract_strided_slice %82 {offsets = [0, 0], sizes = [32, 32], strides = [1, 1]} : vector<32x128xbf16> to vector<32x32xbf16>
    %84 = vector.extract_strided_slice %17 {offsets = [0, 0], sizes = [32, 32], strides = [1, 1]} : vector<32x128xbf16> to vector<32x32xbf16>
    %cst_22 = arith.constant dense<0.000000e+00> : vector<32x32xf32>
    %85 = tpu.matmul %83, %84, %cst_22 {dimension_numbers = #tpu.dot_dimension_numbers<[1], [0], [0], [1], [0, 0, 1, 1], [], []>} : vector<32x32xbf16>, vector<32x32xbf16>, vector<32x32xf32> -> vector<32x32xf32>
    %86 = vector.extract_strided_slice %82 {offsets = [0, 32], sizes = [32, 32], strides = [1, 1]} : vector<32x128xbf16> to vector<32x32xbf16>
    %87 = vector.extract_strided_slice %17 {offsets = [0, 32], sizes = [32, 32], strides = [1, 1]} : vector<32x128xbf16> to vector<32x32xbf16>
    %cst_23 = arith.constant dense<0.000000e+00> : vector<32x32xf32>
    %88 = tpu.matmul %86, %87, %cst_23 {dimension_numbers = #tpu.dot_dimension_numbers<[1], [0], [0], [1], [0, 0, 1, 1], [], []>} : vector<32x32xbf16>, vector<32x32xbf16>, vector<32x32xf32> -> vector<32x32xf32>
    %89 = vector.extract_strided_slice %82 {offsets = [0, 64], sizes = [32, 32], strides = [1, 1]} : vector<32x128xbf16> to vector<32x32xbf16>
    %90 = vector.extract_strided_slice %17 {offsets = [0, 64], sizes = [32, 32], strides = [1, 1]} : vector<32x128xbf16> to vector<32x32xbf16>
    %cst_24 = arith.constant dense<0.000000e+00> : vector<32x32xf32>
    %91 = tpu.matmul %89, %90, %cst_24 {dimension_numbers = #tpu.dot_dimension_numbers<[1], [0], [0], [1], [0, 0, 1, 1], [], []>} : vector<32x32xbf16>, vector<32x32xbf16>, vector<32x32xf32> -> vector<32x32xf32>
    %92 = vector.extract_strided_slice %82 {offsets = [0, 96], sizes = [32, 32], strides = [1, 1]} : vector<32x128xbf16> to vector<32x32xbf16>
    %93 = vector.extract_strided_slice %17 {offsets = [0, 96], sizes = [32, 32], strides = [1, 1]} : vector<32x128xbf16> to vector<32x32xbf16>
    %cst_25 = arith.constant dense<0.000000e+00> : vector<32x32xf32>
    %94 = tpu.matmul %92, %93, %cst_25 {dimension_numbers = #tpu.dot_dimension_numbers<[1], [0], [0], [1], [0, 0, 1, 1], [], []>} : vector<32x32xbf16>, vector<32x32xbf16>, vector<32x32xf32> -> vector<32x32xf32>
    %95 = tpu.concatenate %85, %88, %91, %94 in 1 : vector<32x32xf32>, vector<32x32xf32>, vector<32x32xf32>, vector<32x32xf32> -> vector<32x128xf32>
    %96 = arith.truncf %95 : vector<32x128xf32> to vector<32x128xbf16>
    %c0_26 = arith.constant 0 : index
    %c0_27 = arith.constant 0 : index
    %c384 = arith.constant 384 : index
    %97 = vector.load %arg3[%c0_26, %c0_27, %c384] : memref<1x128x896xbf16, #tpu.memory_space<vmem>>, vector<1x128x128xbf16>
    %98 = vector.shape_cast %97 : vector<1x128x128xbf16> to vector<128x128xbf16>
    %cst_28 = arith.constant dense<0.000000e+00> : vector<32x128xf32>
    %99 = tpu.matmul %96, %98, %cst_28 {dimension_numbers = #tpu.dot_dimension_numbers<[1], [0], [0], [1], [0, 0, 1, 1], [], []>} : vector<32x128xbf16>, vector<128x128xbf16>, vector<32x128xf32> -> vector<32x128xf32>
    %c0_29 = arith.constant 0 : index
    %c0_30 = arith.constant 0 : index
    %c384_31 = arith.constant 384 : index
    %100 = vector.load %arg5[%c0_29, %c0_30, %c384_31] : memref<1x1x1536xf32, #tpu.memory_space<vmem>>, vector<1x1x128xf32>
    %101 = vector.shape_cast %100 : vector<1x1x128xf32> to vector<1x128xf32>
    %102 = vector.broadcast %101 : vector<1x128xf32> to vector<32x128xf32>
    %103 = arith.addf %99, %102 : vector<32x128xf32>
    %104 = arith.addf %3, %103 : vector<32x128xf32>
    %c0_32 = arith.constant 0 : index
    %c0_33 = arith.constant 0 : index
    %c512 = arith.constant 512 : index
    %105 = vector.load %arg5[%c0_32, %c0_33, %c512] : memref<1x1x1536xf32, #tpu.memory_space<vmem>>, vector<1x1x128xf32>
    %106 = vector.shape_cast %105 : vector<1x1x128xf32> to vector<1x128xf32>
    %c0_34 = arith.constant 0 : index
    %c0_35 = arith.constant 0 : index
    %c640 = arith.constant 640 : index
    %107 = vector.load %arg5[%c0_34, %c0_35, %c640] : memref<1x1x1536xf32, #tpu.memory_space<vmem>>, vector<1x1x128xf32>
    %108 = vector.shape_cast %107 : vector<1x1x128xf32> to vector<1x128xf32>
    %cst_36 = arith.constant dense<0.000000e+00> : vector<32xf32>
    %109 = vector.multi_reduction <add>, %104, %cst_36 [1] : vector<32x128xf32> to vector<32xf32>
    %110 = vector.shape_cast %109 : vector<32xf32> to vector<32x1xf32>
    %cst_37 = arith.constant 1.280000e+02 : f32
    %111 = vector.broadcast %cst_37 : f32 to vector<32x1xf32>
    %112 = arith.divf %110, %111 : vector<32x1xf32>
    %113 = vector.broadcast %112 : vector<32x1xf32> to vector<32x128xf32>
    %114 = arith.subf %104, %113 : vector<32x128xf32>
    %115 = arith.mulf %114, %114 : vector<32x128xf32>
    %cst_38 = arith.constant dense<0.000000e+00> : vector<32xf32>
    %116 = vector.multi_reduction <add>, %115, %cst_38 [1] : vector<32x128xf32> to vector<32xf32>
    %117 = vector.shape_cast %116 : vector<32xf32> to vector<32x1xf32>
    %cst_39 = arith.constant 1.280000e+02 : f32
    %118 = vector.broadcast %cst_39 : f32 to vector<32x1xf32>
    %119 = arith.divf %117, %118 : vector<32x1xf32>
    %120 = vector.broadcast %112 : vector<32x1xf32> to vector<32x128xf32>
    %121 = arith.subf %104, %120 : vector<32x128xf32>
    %cst_40 = arith.constant 9.99999996E-13 : f32
    %122 = vector.broadcast %cst_40 : f32 to vector<32x1xf32>
    %123 = arith.addf %119, %122 : vector<32x1xf32>
    %124 = math.rsqrt %123 : vector<32x1xf32>
    %125 = vector.broadcast %124 : vector<32x1xf32> to vector<32x128xf32>
    %126 = arith.mulf %121, %125 : vector<32x128xf32>
    %127 = vector.broadcast %106 : vector<1x128xf32> to vector<32x128xf32>
    %128 = arith.mulf %126, %127 : vector<32x128xf32>
    %129 = vector.broadcast %108 : vector<1x128xf32> to vector<32x128xf32>
    %130 = arith.addf %128, %129 : vector<32x128xf32>
    %131 = arith.truncf %130 : vector<32x128xf32> to vector<32x128xbf16>
    %c0_41 = arith.constant 0 : index
    %c0_42 = arith.constant 0 : index
    %c512_43 = arith.constant 512 : index
    %132 = vector.load %arg3[%c0_41, %c0_42, %c512_43] : memref<1x128x896xbf16, #tpu.memory_space<vmem>>, vector<1x128x256xbf16>
    %133 = vector.shape_cast %132 : vector<1x128x256xbf16> to vector<128x256xbf16>
    %cst_44 = arith.constant dense<0.000000e+00> : vector<32x256xf32>
    %134 = tpu.matmul %131, %133, %cst_44 {dimension_numbers = #tpu.dot_dimension_numbers<[1], [0], [0], [1], [0, 0, 1, 1], [], []>} : vector<32x128xbf16>, vector<128x256xbf16>, vector<32x256xf32> -> vector<32x256xf32>
    %c0_45 = arith.constant 0 : index
    %c0_46 = arith.constant 0 : index
    %c768 = arith.constant 768 : index
    %135 = vector.load %arg5[%c0_45, %c0_46, %c768] : memref<1x1x1536xf32, #tpu.memory_space<vmem>>, vector<1x1x256xf32>
    %136 = vector.shape_cast %135 : vector<1x1x256xf32> to vector<1x256xf32>
    %137 = vector.broadcast %136 : vector<1x256xf32> to vector<32x256xf32>
    %138 = arith.addf %134, %137 : vector<32x256xf32>
    %139 = arith.mulf %138, %138 : vector<32x256xf32>
    %140 = arith.mulf %138, %139 : vector<32x256xf32>
    %cst_47 = arith.constant 4.471500e-02 : f32
    %141 = vector.broadcast %cst_47 : f32 to vector<32x256xf32>
    %142 = arith.mulf %141, %140 : vector<32x256xf32>
    %143 = arith.addf %138, %142 : vector<32x256xf32>
    %cst_48 = arith.constant 0.797884583 : f32
    %144 = vector.broadcast %cst_48 : f32 to vector<32x256xf32>
    %145 = arith.mulf %144, %143 : vector<32x256xf32>
    %146 = math.tanh %145 : vector<32x256xf32>
    %cst_49 = arith.constant 1.000000e+00 : f32
    %147 = vector.broadcast %cst_49 : f32 to vector<32x256xf32>
    %148 = arith.addf %147, %146 : vector<32x256xf32>
    %cst_50 = arith.constant 5.000000e-01 : f32
    %149 = vector.broadcast %cst_50 : f32 to vector<32x256xf32>
    %150 = arith.mulf %149, %148 : vector<32x256xf32>
    %151 = arith.mulf %138, %150 : vector<32x256xf32>
    %152 = arith.truncf %151 : vector<32x256xf32> to vector<32x256xbf16>
    %c0_51 = arith.constant 0 : index
    %c0_52 = arith.constant 0 : index
    %c0_53 = arith.constant 0 : index
    %153 = vector.load %arg4[%c0_51, %c0_52, %c0_53] : memref<1x256x128xbf16, #tpu.memory_space<vmem>>, vector<1x256x128xbf16>
    %154 = vector.shape_cast %153 : vector<1x256x128xbf16> to vector<256x128xbf16>
    %cst_54 = arith.constant dense<0.000000e+00> : vector<32x128xf32>
    %155 = tpu.matmul %152, %154, %cst_54 {dimension_numbers = #tpu.dot_dimension_numbers<[1], [0], [0], [1], [0, 0, 1, 1], [], []>} : vector<32x256xbf16>, vector<256x128xbf16>, vector<32x128xf32> -> vector<32x128xf32>
    %c0_55 = arith.constant 0 : index
    %c0_56 = arith.constant 0 : index
    %c1024 = arith.constant 1024 : index
    %156 = vector.load %arg5[%c0_55, %c0_56, %c1024] : memref<1x1x1536xf32, #tpu.memory_space<vmem>>, vector<1x1x128xf32>
    %157 = vector.shape_cast %156 : vector<1x1x128xf32> to vector<1x128xf32>
    %158 = vector.broadcast %157 : vector<1x128xf32> to vector<32x128xf32>
    %159 = arith.addf %155, %158 : vector<32x128xf32>
    %160 = arith.addf %130, %159 : vector<32x128xf32>
    %c0_57 = arith.constant 0 : index
    %c0_58 = arith.constant 0 : index
    %c1152 = arith.constant 1152 : index
    %161 = vector.load %arg5[%c0_57, %c0_58, %c1152] : memref<1x1x1536xf32, #tpu.memory_space<vmem>>, vector<1x1x128xf32>
    %162 = vector.shape_cast %161 : vector<1x1x128xf32> to vector<1x128xf32>
    %c0_59 = arith.constant 0 : index
    %c0_60 = arith.constant 0 : index
    %c1280 = arith.constant 1280 : index
    %163 = vector.load %arg5[%c0_59, %c0_60, %c1280] : memref<1x1x1536xf32, #tpu.memory_space<vmem>>, vector<1x1x128xf32>
    %164 = vector.shape_cast %163 : vector<1x1x128xf32> to vector<1x128xf32>
    %cst_61 = arith.constant dense<0.000000e+00> : vector<32xf32>
    %165 = vector.multi_reduction <add>, %160, %cst_61 [1] : vector<32x128xf32> to vector<32xf32>
    %166 = vector.shape_cast %165 : vector<32xf32> to vector<32x1xf32>
    %cst_62 = arith.constant 1.280000e+02 : f32
    %167 = vector.broadcast %cst_62 : f32 to vector<32x1xf32>
    %168 = arith.divf %166, %167 : vector<32x1xf32>
    %169 = vector.broadcast %168 : vector<32x1xf32> to vector<32x128xf32>
    %170 = arith.subf %160, %169 : vector<32x128xf32>
    %171 = arith.mulf %170, %170 : vector<32x128xf32>
    %cst_63 = arith.constant dense<0.000000e+00> : vector<32xf32>
    %172 = vector.multi_reduction <add>, %171, %cst_63 [1] : vector<32x128xf32> to vector<32xf32>
    %173 = vector.shape_cast %172 : vector<32xf32> to vector<32x1xf32>
    %cst_64 = arith.constant 1.280000e+02 : f32
    %174 = vector.broadcast %cst_64 : f32 to vector<32x1xf32>
    %175 = arith.divf %173, %174 : vector<32x1xf32>
    %176 = vector.broadcast %168 : vector<32x1xf32> to vector<32x128xf32>
    %177 = arith.subf %160, %176 : vector<32x128xf32>
    %cst_65 = arith.constant 9.99999996E-13 : f32
    %178 = vector.broadcast %cst_65 : f32 to vector<32x1xf32>
    %179 = arith.addf %175, %178 : vector<32x1xf32>
    %180 = math.rsqrt %179 : vector<32x1xf32>
    %181 = vector.broadcast %180 : vector<32x1xf32> to vector<32x128xf32>
    %182 = arith.mulf %177, %181 : vector<32x128xf32>
    %183 = vector.broadcast %162 : vector<1x128xf32> to vector<32x128xf32>
    %184 = arith.mulf %182, %183 : vector<32x128xf32>
    %185 = vector.broadcast %164 : vector<1x128xf32> to vector<32x128xf32>
    %186 = arith.addf %184, %185 : vector<32x128xf32>
    %c0_66 = arith.constant 0 : index
    %c0_67 = arith.constant 0 : index
    %187 = vector.load %arg7[%c0_66, %c0_67] : memref<32x128xf32, #tpu.memory_space<vmem>>, vector<32x128xf32>
    tpu.vector_store %arg7[%c0_66, %c0_67], %186 {strides = array<i32>} : memref<32x128xf32, #tpu.memory_space<vmem>>, vector<32x128xf32>,
    %c1_i32 = arith.constant 1 : i32
    %188 = arith.cmpi eq, %arg0, %c1_i32 : i32
    %189 = arith.extui %188 : i1 to i32
    %c0_i32_68 = arith.constant 0 : i32
    %190 = arith.cmpi ne, %189, %c0_i32_68 : i32
    scf.if %190 {
      %191 = arith.truncf %186 : vector<32x128xf32> to vector<32x128xbf16>
      %c0_69 = arith.constant 0 : index
      %c0_70 = arith.constant 0 : index
      %c768_71 = arith.constant 768 : index
      %192 = vector.load %arg3[%c0_69, %c0_70, %c768_71] : memref<1x128x896xbf16, #tpu.memory_space<vmem>>, vector<1x128x128xbf16>
      %193 = vector.shape_cast %192 : vector<1x128x128xbf16> to vector<128x128xbf16>
      %cst_72 = arith.constant dense<0.000000e+00> : vector<32x128xf32>
      %194 = tpu.matmul %191, %193, %cst_72 {dimension_numbers = #tpu.dot_dimension_numbers<[1], [0], [0], [1], [0, 0, 1, 1], [], []>} : vector<32x128xbf16>, vector<128x128xbf16>, vector<32x128xf32> -> vector<32x128xf32>
      %c0_73 = arith.constant 0 : index
      %c0_74 = arith.constant 0 : index
      %c1408 = arith.constant 1408 : index
      %195 = vector.load %arg5[%c0_73, %c0_74, %c1408] : memref<1x1x1536xf32, #tpu.memory_space<vmem>>, vector<1x1x128xf32>
      %196 = vector.shape_cast %195 : vector<1x1x128xf32> to vector<1x128xf32>
      %197 = vector.broadcast %196 : vector<1x128xf32> to vector<32x128xf32>
      %198 = arith.addf %194, %197 : vector<32x128xf32>
      %c0_75 = arith.constant 0 : index
      %c0_76 = arith.constant 0 : index
      %199 = vector.load %arg6[%c0_75, %c0_76] : memref<32x128xf32, #tpu.memory_space<vmem>>, vector<32x128xf32>
      tpu.vector_store %arg6[%c0_75, %c0_76], %198 {strides = array<i32>} : memref<32x128xf32, #tpu.memory_space<vmem>>, vector<32x128xf32>,
    } else {
    }
    return
  }
  func.func @transform_0(%arg0: i32) -> (i32, i32) {
    %c0_i32 = arith.constant 0 : i32
    %c0_i32_0 = arith.constant 0 : i32
    %c0_i32_1 = arith.constant 0 : i32
    return %c0_i32, %c0_i32_0 : i32, i32
  }
  func.func @transform_1(%arg0: i32) -> (i32, i32) {
    %c0_i32 = arith.constant 0 : i32
    %c0_i32_0 = arith.constant 0 : i32
    %c0_i32_1 = arith.constant 0 : i32
    return %c0_i32, %c0_i32_0 : i32, i32
  }
  func.func @transform_2(%arg0: i32) -> (i32, i32, i32) {
    %c0_i32 = arith.constant 0 : i32
    %c0_i32_0 = arith.constant 0 : i32
    %c0_i32_1 = arith.constant 0 : i32
    return %arg0, %c0_i32, %c0_i32_0 : i32, i32, i32
  }
  func.func @transform_3(%arg0: i32) -> (i32, i32, i32) {
    %c0_i32 = arith.constant 0 : i32
    %c0_i32_0 = arith.constant 0 : i32
    %c0_i32_1 = arith.constant 0 : i32
    return %arg0, %c0_i32, %c0_i32_0 : i32, i32, i32
  }
  func.func @transform_4(%arg0: i32) -> (i32, i32, i32) {
    %c0_i32 = arith.constant 0 : i32
    %c0_i32_0 = arith.constant 0 : i32
    %c0_i32_1 = arith.constant 0 : i32
    return %arg0, %c0_i32, %c0_i32_0 : i32, i32, i32
  }
  func.func @transform_5(%arg0: i32) -> (i32, i32) {
    %c0_i32 = arith.constant 0 : i32
    %c0_i32_0 = arith.constant 0 : i32
    %c0_i32_1 = arith.constant 0 : i32
    return %c0_i32, %c0_i32_0 : i32, i32
  }
}

</mosaic_0001>

<bundles_post_ra>
// kernel: tile.9
= control target key start
LH: loop header
LB: loop body
LE: loop exit
PB: predicated region body
PF: predicated region fallthrough
CT: control target
= control target key end

     0   :  { %vm163_vm0 = vcmask 1047556   ;;  %s422_s10 = smov 96   ;;  %vm165_vm1 = vcmask 261120   ;;  %s568_s0 = inlined_call_operand.vmem [shape: f32[32,4,32], index: 0, kind: input, shape index: {}]   ;;  %s569_s1 = inlined_call_operand.hbm [shape: f32[32,128], index: 1, kind: output, shape index: {}]  }
   0x1   :  { %v387_v0 = vld [vmem:[%s568_s0 + $0x1c] sm:$0xf]  ;;  %v388_v1 = vld [vmem:[%s568_s0 + $0x18] sm:$0xf]  ;;  %v389_v2 = vld [vmem:[%s568_s0 + $0x14] sm:$0xf] }
   0x2   :  { %129 = vst [vmem:[#allocation2 + $0x38] sm:$0xf] %v387_v0  ;;  %134 = vst [vmem:[#allocation2 + $0x30] sm:$0xf] %v388_v1  ;;  %v390_v3 = vld [vmem:[%s568_s0 + $0x10] sm:$0xf] }
   0x3   :  { %139 = vst [vmem:[#allocation2 + $0x28] sm:$0xf] %v389_v2  ;;  %v391_v4 = vld [vmem:[%s568_s0 + $0xc] sm:$0xf]  ;;  %v392_v5 = vld [vmem:[%s568_s0 + $0x8] sm:$0xf] }
   0x4   :  { %144 = vst [vmem:[#allocation2 + $0x20] sm:$0xf] %v390_v3  ;;  %149 = vst [vmem:[#allocation2 + $0x18] sm:$0xf] %v391_v4  ;;  %v393_v6 = vld [vmem:[%s568_s0 + $0x4] sm:$0xf] }
   0x5   :  { %154 = vst [vmem:[#allocation2 + $0x10] sm:$0xf] %v392_v5  ;;  %v159_v7 = vld [vmem:[%s568_s0] sm:$0xf]  ;;  %158 = vst [vmem:[#allocation2 + $0x8] sm:$0xf] %v393_v6 }
   0x6   :  { %160 = vst [vmem:[#allocation2] sm:$0xf] %v159_v7  ;;  %v371_v8 = vld [vmem:[%s568_s0 + $0x5c] sm:$0xf]  ;;  %v372_v9 = vld [vmem:[%s568_s0 + $0x58] sm:$0xf] }
   0x7   :  { %v373_v10 = vld [vmem:[%s568_s0 + $0x54] sm:$0xf]  ;;  %49 = vst [vmem:[#allocation2 + $0xb8] sm:$0xf] %v371_v8  ;;  %54 = vst [vmem:[#allocation2 + $0xb0] sm:$0xf] %v372_v9 }
   0x8   :  { %59 = vst [vmem:[#allocation2 + $0xa8] sm:$0xf] %v373_v10  ;;  %v374_v11 = vld [vmem:[%s568_s0 + $0x50] sm:$0xf]  ;;  %v375_v12 = vld [vmem:[%s568_s0 + $0x4c] sm:$0xf] }
   0x9   :  { %v376_v13 = vld [vmem:[%s568_s0 + $0x48] sm:$0xf]  ;;  %64 = vst [vmem:[#allocation2 + $0xa0] sm:$0xf] %v374_v11  ;;  %69 = vst [vmem:[#allocation2 + $0x98] sm:$0xf] %v375_v12 }
   0xa   :  { %74 = vst [vmem:[#allocation2 + $0x90] sm:$0xf] %v376_v13  ;;  %v377_v14 = vld [vmem:[%s568_s0 + $0x44] sm:$0xf]  ;;  %v378_v15 = vld [vmem:[%s568_s0 + $0x40] sm:$0xf] }
   0xb   :  { %v379_v16 = vld [vmem:[%s568_s0 + $0x3c] sm:$0xf]  ;;  %79 = vst [vmem:[#allocation2 + $0x88] sm:$0xf] %v377_v14  ;;  %84 = vst [vmem:[#allocation2 + $0x80] sm:$0xf] %v378_v15 }
   0xc   :  { %89 = vst [vmem:[#allocation2 + $0x78] sm:$0xf] %v379_v16  ;;  %v380_v17 = vld [vmem:[%s568_s0 + $0x38] sm:$0xf]  ;;  %v381_v18 = vld [vmem:[%s568_s0 + $0x34] sm:$0xf] }
   0xd   :  { %v382_v19 = vld [vmem:[%s568_s0 + $0x30] sm:$0xf]  ;;  %94 = vst [vmem:[#allocation2 + $0x70] sm:$0xf] %v380_v17  ;;  %99 = vst [vmem:[#allocation2 + $0x68] sm:$0xf] %v381_v18 }
   0xe   :  { %104 = vst [vmem:[#allocation2 + $0x60] sm:$0xf] %v382_v19  ;;  %v383_v20 = vld [vmem:[%s568_s0 + $0x2c] sm:$0xf]  ;;  %v384_v21 = vld [vmem:[%s568_s0 + $0x28] sm:$0xf] }
   0xf   :  { %v385_v22 = vld [vmem:[%s568_s0 + $0x24] sm:$0xf]  ;;  %109 = vst [vmem:[#allocation2 + $0x58] sm:$0xf] %v383_v20  ;;  %114 = vst [vmem:[#allocation2 + $0x50] sm:$0xf] %v384_v21 }
  0x10   :  { %119 = vst [vmem:[#allocation2 + $0x48] sm:$0xf] %v385_v22  ;;  %v386_v23 = vld [vmem:[%s568_s0 + $0x20] sm:$0xf]  ;;  %v363_v24 = vld [vmem:[%s568_s0 + $0x7c] sm:$0xf] }
  0x11   :  { %v364_v25 = vld [vmem:[%s568_s0 + $0x78] sm:$0xf]  ;;  %124 = vst [vmem:[#allocation2 + $0x40] sm:$0xf] %v386_v23  ;;  %9 = vst [vmem:[#allocation2 + $0xf8] sm:$0xf] %v363_v24 }
  0x12   :  { %v197_v26 = vld [vmem:[#allocation2 + $0x3] ss:$8 sm:$0xf0]   ;;  %14 = vst [vmem:[#allocation2 + $0xf0] sm:$0xf] %v364_v25 }
  0x13   :  { %v365_v27 = vld [vmem:[%s568_s0 + $0x74] sm:$0xf]  ;;  %v195_v28 = vld [vmem:[#allocation2 + $0x3] ss:$8 sm:$0xf]  }
  0x14   :  { %19 = vst [vmem:[#allocation2 + $0xe8] sm:$0xf] %v365_v27  ;;  %v366_v29 = vld [vmem:[%s568_s0 + $0x70] sm:$0xf]  ;;  %v199_v30 = vsel %vm163_vm0, %v197_v26, %v195_v28  ;;  %v367_v31 = vld [vmem:[%s568_s0 + $0x6c] sm:$0xf] }
  0x15   :  { %24 = vst [vmem:[#allocation2 + $0xe0] sm:$0xf] %v366_v29  ;;  %v368_v32 = vld [vmem:[%s568_s0 + $0x68] sm:$0xf]  ;;  %v369_v33 = vld [vmem:[%s568_s0 + $0x64] sm:$0xf]  ;;  %200 = vrot.lane.b32.xlu0 %v199_v30, %s422_s10 }
  0x16   :  { %v218_v34 = vld [vmem:[#allocation2 + $0x83] ss:$8 sm:$0xf0]   ;;  %29 = vst [vmem:[#allocation2 + $0xd8] sm:$0xf] %v367_v31 }
  0x17   :  { %34 = vst [vmem:[#allocation2 + $0xd0] sm:$0xf] %v368_v32  ;;  %39 = vst [vmem:[#allocation2 + $0xc8] sm:$0xf] %v369_v33  ;;  %v370_v35 = vld [vmem:[%s568_s0 + $0x60] sm:$0xf] }
  0x18   :  { %v216_v36 = vld [vmem:[#allocation2 + $0x83] ss:$8 sm:$0xf]   ;;  %44 = vst [vmem:[#allocation2 + $0xc0] sm:$0xf] %v370_v35  ;;  %s423_s0 = smov 64  }
  0x19   :  { %v220_v37 = vsel %vm163_vm0, %v218_v34, %v216_v36  ;;  %v207_v38 = vld [vmem:[#allocation2 + $0x43] ss:$8 sm:$0xf0]   ;;  %v238_v39 = vld [vmem:[#allocation2 + $0x2] ss:$8 sm:$0xf]  }
  0x1a   :  { %221 = vrot.lane.b32.xlu1 %v220_v37, %s422_s10  ;;  %v205_v40 = vld [vmem:[#allocation2 + $0x43] ss:$8 sm:$0xf]   ;;  %v240_v41 = vld [vmem:[#allocation2 + $0x2] ss:$8 sm:$0xf0]  }
  0x1b   :  { %v209_v42 = vsel %vm163_vm0, %v207_v38, %v205_v40  ;;  %v250_v44 = vld [vmem:[#allocation2 + $0x42] ss:$8 sm:$0xf0]   ;;  %v242_v45 = vsel %vm163_vm0, %v240_v41, %v238_v39  ;;  %v281_v52 = vld [vmem:[#allocation2 + $0x1] ss:$8 sm:$0xf]  }
  0x1c   :  { %210 = vrot.lane.b32.xlu0 %v209_v42, %s422_s10  ;;  %v229_v43 = vld [vmem:[#allocation2 + $0xc3] ss:$8 sm:$0xf0]   ;;  %v248_v46 = vld [vmem:[#allocation2 + $0x42] ss:$8 sm:$0xf]  }
  0x1d   :  { %v259_v47 = vld [vmem:[#allocation2 + $0x82] ss:$8 sm:$0xf]   ;;  %v252_v53 = vsel %vm163_vm0, %v250_v44, %v248_v46  ;;  %v283_v55 = vld [vmem:[#allocation2 + $0x1] ss:$8 sm:$0xf0]  }
  0x1e   :  { %v261_v49 = vld [vmem:[#allocation2 + $0x82] ss:$8 sm:$0xf0]   ;;  %v161_v56 = vld [vmem:[#allocation2] ss:$8 sm:$0xf]   ;;  %v285_v5 = vsel %vm163_vm0, %v283_v55, %v281_v52 }
  0x1f   :  { %v227_v48 = vld [vmem:[#allocation2 + $0xc3] ss:$8 sm:$0xf]   ;;  %v272_v51 = vld [vmem:[#allocation2 + $0xc2] ss:$8 sm:$0xf0]   ;;  %v263_v54 = vsel %vm163_vm0, %v261_v49, %v259_v47 }
  0x20   :  { %v231_v50 = vsel %vm163_vm0, %v229_v43, %v227_v48  ;;  %243 = vrot.lane.b32.xlu0 %v242_v45, %s423_s0  ;;  %v270_v57 = vld [vmem:[#allocation2 + $0xc2] ss:$8 sm:$0xf]   ;;  %v162_v58 = vld [vmem:[#allocation2] ss:$8 sm:$0xf0]  }
  0x21   :  { %232 = vrot.lane.b32.xlu1 %v231_v50, %s422_s10  ;;  %v164_v59 = vsel %vm163_vm0, %v162_v58, %v161_v56  ;;  %v177_v60 = vld [vmem:[#allocation2 + $0x80] ss:$8 sm:$0xf]   ;;  %v291_v62 = vld [vmem:[#allocation2 + $0x41] ss:$8 sm:$0xf]   ;;  %v274_v4 = vsel %vm163_vm0, %v272_v51, %v270_v57 }
  0x22   :  { %v179_v61 = vld [vmem:[#allocation2 + $0x80] ss:$8 sm:$0xf0]   ;;  %v293_v63 = vld [vmem:[#allocation2 + $0x41] ss:$8 sm:$0xf0]  }
  0x23   :  { %v302_v0 = vld [vmem:[#allocation2 + $0x81] ss:$8 sm:$0xf]   ;;  %166 = vst.msk [vmem:[#allocation0] sm:$0xff] %vm165_vm1, %v164_v59   ;;  %v181_v1 = vsel %vm163_vm0, %v179_v61, %v177_v60 }
  0x24   :  { %264 = vrot.lane.b32.xlu0 %v263_v54, %s423_s0  ;;  %v168_v2 = vld [vmem:[#allocation2 + $0x40] ss:$8 sm:$0xf]   ;;  %184 = vst.msk [vmem:[#allocation0 + $0x10] sm:$0xff] %vm165_vm1, %v181_v1  }
  0x25   :  { %253 = vrot.lane.b32.xlu1 %v252_v53, %s423_s0  ;;  %v170_v3 = vld [vmem:[#allocation2 + $0x40] ss:$8 sm:$0xf0]   ;;  %v304_v9 = vld [vmem:[#allocation2 + $0x81] ss:$8 sm:$0xf0]  }
  0x26   :  { %v172_v6 = vsel %vm163_vm0, %v170_v3, %v168_v2  ;;  %v186_v7 = vld [vmem:[#allocation2 + $0xc0] ss:$8 sm:$0xf]  }
  0x27   :  { %v188_v8 = vld [vmem:[#allocation2 + $0xc0] ss:$8 sm:$0xf0]   ;;  %175 = vst.msk [vmem:[#allocation0 + $0x8] sm:$0xff] %vm165_vm1, %v172_v6  }
  0x28   :  { %v190_v10 = vsel %vm163_vm0, %v188_v8, %v186_v7 }
  0x29   :  { %2 = vsyncpa [#allocation1], 0  ;;  %193 = vst.msk [vmem:[#allocation0 + $0x18] sm:$0xff] %vm165_vm1, %v190_v10   ;;  %275 = vrot.lane.b32.xlu1 %v274_v4, %s423_s0  ;;  %s424_s13 = smov 32   ;;  %v295_v11 = vsel %vm163_vm0, %v293_v63, %v291_v62  ;;  %v306_v12 = vsel %vm163_vm0, %v304_v9, %v302_v0  ;;  %vm202_vm2 = vcmask 1048320   ;;  %vm245_vm3 = vcmask 785920  }
  0x2a   :  { %286 = vrot.lane.b32.xlu0 %v285_v5, %s424_s13  ;;  %v313_v13 = vld [vmem:[#allocation2 + $0xc1] ss:$8 sm:$0xf]   ;;  %vm288_vm4 = vcmask 523520   ;;  %s425_s14 = smov [#allocation0]  }
  0x2b   :  { %v315_v14 = vld [vmem:[#allocation2 + $0xc1] ss:$8 sm:$0xf0]   ;;  %s327_s15 = sshll.u32 %s425_s14, 4  ;;  %s328_s15 = int_to_ptr.vmem [resolvable:$true] %s327_s15 }
  0x2c   :  { %v317_v15 = vsel %vm163_vm0, %v315_v14, %v313_v13  ;;  %s398_s16 = scalar_lea.vmem %s328_s15, 512  ;;  %p403_p1 = scmp.lt.s32.totalorder %s328_s15, %s328_s15 }
  0x2d   :  { %296 = vrot.lane.b32.xlu1 %v295_v11, %s424_s13  ;;  %p399_p0 = scmp.ne.s32.totalorder %s328_s15, %s398_s16  ;;  %p404_p2 = scmp.lt.s32.totalorder %s398_s16, %s398_s16 }
  0x2e   :  { %307 = vrot.lane.b32.xlu0 %v306_v12, %s424_s13 }
  0x2f   :  { %p405_p3 = por %p404_p2, %p403_p1 }
  0x31   :  { %318 = vrot.lane.b32.xlu1 %v317_v15, %s424_s13  ;;  %p406_p4 = pnand %p405_p3, %p399_p0 }
  0x87   :  { %v201_v16 = vpop.permute.xlu0 %200  }
  0x88   :  { %203 = vst.msk [vmem:[#allocation0] sm:$0xff] %vm202_vm2, %v201_v16  }
  0x8c   :  { %v222_v17 = vpop.permute.xlu1 %221  }
  0x8d   :  { %225 = vst.msk [vmem:[#allocation0 + $0x10] sm:$0xff] %vm202_vm2, %v222_v17  }
  0x8e   :  { %v211_v18 = vpop.permute.xlu0 %210  }
  0x8f   :  { %214 = vst.msk [vmem:[#allocation0 + $0x8] sm:$0xff] %vm202_vm2, %v211_v18  }
  0x92   :  { %v244_v20 = vpop.permute.xlu0 %243  }
  0x93   :  { %v233_v19 = vpop.permute.xlu1 %232   ;;  %246 = vst.msk [vmem:[#allocation0] sm:$0xff] %vm245_vm3, %v244_v20  }
  0x94   :  { %236 = vst.msk [vmem:[#allocation0 + $0x18] sm:$0xff] %vm202_vm2, %v233_v19  }
  0x96   :  { %v265_v22 = vpop.permute.xlu0 %264  }
  0x97   :  { %v254_v21 = vpop.permute.xlu1 %253   ;;  %268 = vst.msk [vmem:[#allocation0 + $0x10] sm:$0xff] %vm245_vm3, %v265_v22  }
  0x98   :  { %257 = vst.msk [vmem:[#allocation0 + $0x8] sm:$0xff] %vm245_vm3, %v254_v21  }
  0x9b   :  { %v276_v23 = vpop.permute.xlu1 %275  }
  0x9c   :  { %v287_v24 = vpop.permute.xlu0 %286   ;;  %279 = vst.msk [vmem:[#allocation0 + $0x18] sm:$0xff] %vm245_vm3, %v276_v23  }
  0x9d   :  { %289 = vst.msk [vmem:[#allocation0] sm:$0xff] %vm288_vm4, %v287_v24  }
  0x9f   :  { %v297_v25 = vpop.permute.xlu1 %296  }
  0xa0   :  { %v308_v26 = vpop.permute.xlu0 %307   ;;  %300 = vst.msk [vmem:[#allocation0 + $0x8] sm:$0xff] %vm288_vm4, %v297_v25  }
  0xa1   :  { %311 = vst.msk [vmem:[#allocation0 + $0x10] sm:$0xff] %vm288_vm4, %v308_v26  }
  0xa3   :  { %v319_v27 = vpop.permute.xlu1 %318  }
  0xa4   :  { %322 = vst.msk [vmem:[#allocation0 + $0x18] sm:$0xff] %vm288_vm4, %v319_v27  }
  0xa5   :  { %409 = shalt.err (!%p406_p4)
}
  0xa6   :  { %s410_s19 = scalar_lea.hbm %s569_s1, 512 }
  0xa7   :  { %p411_p5 = scmp.ne.s32.totalorder %s569_s1, %s410_s19  ;;  %p414_p6 = scmp.lt.u32.totalorder %s410_s19, %s569_s1 }
  0xa9   :  { %p416_p7 = pnand %p414_p6, %p411_p5 }
  0xab   :  { %419 = shalt.err (!%p416_p7)
}
  0xac   :  { %330 = dma.vmem_to_hbm [thread:$0]  %s328_s15, 512, %s569_s1, [#allocation1]  }
  0xad   :  { %420 = dma.done.wait [#allocation1], 512  }
  0xae   :  { %421 = vsyncadd [#allocation1], 4294966784 }
  0xaf   :  { %332 = vsyncpa [#allocation1], 1 }

// kernel: bert_encoder_module_forward.1
= control target key start
LH: loop header
LB: loop body
LE: loop exit
PB: predicated region body
PF: predicated region fallthrough
CT: control target
= control target key end

     0   :  { %s4007_s0 = inlined_call_operand.hbm [shape: f32[32,128], index: 0, kind: input, shape index: {}]   ;;  %s4008_s1 = inlined_call_operand.hbm [shape: f32[32,128], index: 1, kind: input, shape index: {}]   ;;  %s4009_s2 = inlined_call_operand.hbm [shape: bf16[2,128,896], index: 2, kind: input, shape index: {}]   ;;  %s4010_s3 = inlined_call_operand.hbm [shape: bf16[2,256,128], index: 3, kind: input, shape index: {}]   ;;  %s4011_s4 = inlined_call_operand.hbm [shape: f32[2,1,1536], index: 4, kind: input, shape index: {}]   ;;  %s4012_s5 = inlined_call_operand.hbm [shape: f32[32,128], index: 5, kind: output, shape index: {}]  }
   0x1   :  { %4025 = sst [smem:[#allocation17_spill]] %s4007_s0 }
   0x2   :  { %4026 = sst [smem:[#allocation18_spill]] %s4009_s2 }
   0x3   :  { %10 = vsyncpa [#allocation4], 0 }
   0x4   :  { %11 = vsyncpa [#allocation7], 0 }
   0x5   :  { %12 = vsyncpa [#allocation5], 0  ;;  %s3321_s18 = smov 0   ;;  %s3323_s19 = smov 0  }
   0x6   :  { %s3325_s20 = smov 0   ;;  %s3327_s21 = smov 0  }
   0x7 LB: > { %s3340_s22 = sadd.s32 4294967295, %s3271_s21   ;;  %s3343_s23 = sadd.s32 1, %s3271_s21   ;;  %s3271_s21 = sphi %s3327_s21, %s4055_s21   ;;  %s3267_s20 = sphi %s3325_s20, %s4054_s20   ;;  %s3263_s19 = sphi %s3323_s19, %s4053_s19   ;;  %s3259_s18 = sphi %s3321_s18, %s4052_s18  }
   0x8   : > { %s64_s24 = ssub.s32 %s3271_s21, %s3343_s23  ;;  %s67_s25 = sadd.s32 1, %s3267_s20 }
   0x9   : > { %p65_p0 = scmp.eq.s32.totalorder %s64_s24, 0  ;;  %p74_p1 = scmp.ne.s32.totalorder %s3267_s20, %s3263_s19 }
   0xa   : > { %p75_p2 = scmp.eq.s32.totalorder %s3271_s21, 0  ;;  %p80_p3 = scmp.ne.s32.totalorder %s3263_s19, %s3259_s18 }
   0xb   : > { %s3353_s26 = scalar_select %p65_p0, %s3267_s20, %s67_s25  }
   0xc   : > { %p3355_p4 = por %p75_p2, %p74_p1  ;;  %p4013_p5 = scmp.eq.s32.totalorder %s3340_s22, 0 }
   0xd   : > { %4027 = sst [smem:[#allocation16_spill]] %s3353_s26  ;;  %p2427_p6 = scmp.ge.s32.totalorder %s3271_s21, 1 }
   0xe   : > { %p164_p7 = scmp.lt.s32.totalorder %s3271_s21, 3  ;;  %p3364_p8 = por %p4013_p5, %p80_p3 }
   0xf   : > { %s3273_s30 = smov [#allocation3]   ;;  %p2807_p13 = scmp.lt.s32.totalorder %s3271_s21, 2 }
  0x10   : > { %s4029_s28 = scalar_select %p3364_p8, 1, 0 }
  0x11   : > { %p3369_p10 = pnand %p2427_p6, %p164_p7  ;;  %s176_s6 = sshll.u32 %s3273_s30, 4  ;;  %s177_s6 = int_to_ptr.vmem [resolvable:$true] %s176_s6 }
  0x12   : > { %s203_s8 = sand.u32 1, %s3271_s21   ;;  %s3384_s9 = sand.u32 1, %s3267_s20  }
  0x13   : > { %s4030_s29 = scalar_select %p3369_p10, 1, 0 }
  0x14   : > { %p2788_p11 = pneg %p3369_p10  ;;  %p3388_p0 = pnand %p2807_p13, %p3355_p4 }
  0x15   : > { %s4033_s0 = sld [smem:[#allocation17_spill]] }
  0x16   : > { %p3377_p12 = pnand %p2788_p11, %p4013_p5 }
  0x17   : > { %s4032_s10 = scalar_select %p3388_p0, 1, 0 }
  0x18   : > { %s4031_s7 = scalar_select %p3377_p12, 1, 0 }
  0x19   : > { %p4017_p2 = pneg %p3377_p12 }
  0x1b   : > { %s3053_s13 = scalar_lea.hbm %s4033_s0, 512 }
  0x1c   : > { %p3054_p1 = scmp.ne.s32.totalorder %s4033_s0, %s3053_s13  ;;  %p3060_p4 = scmp.lt.u32.totalorder %s3053_s13, %s4033_s0 }
  0x1e   : > { %p3056_p3 = pnand %p4017_p2, %p3054_p1 }
  0x20   : > { %p3057_p6 = pneg %p3056_p3 }
  0x22   : > { %p3062_p7 = pnand %p3060_p4, %p3057_p6 }
  0x24   : > { %3065 = shalt.err (!%p3062_p7)
}
  0x25   : > { %s3066_s18 = scalar_lea.vmem %s177_s6, 512  ;;  %p3074_p5 = scmp.lt.s32.totalorder %s177_s6, %s177_s6 }
  0x26   : > { %p3067_p11 = scmp.ne.s32.totalorder %s177_s6, %s3066_s18  ;;  %p3075_p8 = scmp.lt.s32.totalorder %s3066_s18, %s3066_s18 }
  0x28   : > { %p3069_p13 = pnand %p3067_p11, %p4017_p2  ;;  %p3076_p10 = por %p3075_p8, %p3074_p5 }
  0x2a   : > { %p3070_p9 = pneg %p3069_p13 }
  0x2c   : > { %p3077_p0 = pnand %p3076_p10, %p3070_p9 }
  0x2e   : > { %3080 = shalt.err (!%p3077_p0)
}
  0x2f   : > { %s4020_s24 = smov 128   ;;  %s4021_s25 = smov 8  }
  0x30   : > { %2791 = dma.hbm_to_vmem [thread:$0]  (!%p3377_p12), %s4033_s0, 512, %s177_s6, [#allocation4], %s4020_s24, %s4020_s24, %s4021_s25  }
  0x31   : > { %s2764_s11 = smul.u32 448, %s3384_s9  ;;  %s2432_s13 = sshll.u32 %s3384_s9, 7 }
  0x32   : > { %s2765_s12 = smul.u32 7168, %s3271_s21  ;;  %s4034_s2 = sld [smem:[#allocation18_spill]] }
  0x33   : > { %s207_s17 = scalar_lea.vmem [#allocation8], %s2764_s11  ;;  %s3429_s26 = scalar_lea.sflag [#allocation4], %s203_s8 }
  0x34   : > { %s214_s18 = sshll.u32 %s207_s17, 4  ;;  %p4035_p8 = scmp.ne.s32.totalorder %s4032_s10, 0  ;;  %s3425_s18 = int_to_ptr.vmem [resolvable:$true] %s214_s18 }
  0x36   : > { %p3435_p9 = pneg %p4035_p8 }
  0x38   : > { %s3423_s16 = scalar_lea.hbm %s4034_s2, %s2765_s12  ;;  %s3086_s11 = scalar_lea.hbm %s4034_s2, 14336 }
  0x39   : > { %s3081_s6 = scalar_lea.hbm %s3423_s16, 7168  ;;  %p3087_p1 = scmp.lt.u32.totalorder %s3423_s16, %s4034_s2 }
  0x3a   : > { %p3082_p5 = scmp.ne.s32.totalorder %s3423_s16, %s3081_s6  ;;  %p3088_p3 = scmp.lt.u32.totalorder %s3086_s11, %s3081_s6 }
  0x3b   : > { %s4036_s27 = scalar_select %p3435_p9, 1, 0 }
  0x3c   : > { %p3084_p10 = pnand %p3435_p9, %p3082_p5  ;;  %p3089_p6 = por %p3088_p3, %p3087_p1 }
  0x3d   : > { %p3090_p4 = scmp.lt.u32.totalorder %s3081_s6, %s3423_s16 }
  0x3e   : > { %p3085_p0 = pneg %p3084_p10 }
  0x3f   : > { %p3091_p7 = por %p3090_p4, %p3089_p6 }
  0x41   : > { %p3092_p11 = pnand %p3091_p7, %p3085_p0 }
  0x43   : > { %3095 = shalt.err (!%p3092_p11)
}
  0x44   : > { %s3096_s8 = scalar_lea.vmem %s3425_s18, 7168  ;;  %s3276_s17 = smov [#allocation8]  }
  0x45   : > { %p3097_p13 = scmp.ne.s32.totalorder %s3425_s18, %s3096_s8  ;;  %s3101_s30 = sshll.u32 %s3276_s17, 4  ;;  %s3102_s30 = int_to_ptr.vmem [resolvable:$false] %s3101_s30 }
  0x46   : > { %s3103_s12 = scalar_lea.vmem %s3102_s30, 14336  ;;  %p3104_p2 = scmp.lt.s32.totalorder %s3425_s18, %s3102_s30 }
  0x47   : > { %p3099_p5 = pnand %p3097_p13, %p3435_p9  ;;  %p3105_p12 = scmp.lt.s32.totalorder %s3103_s12, %s3096_s8 }
  0x49   : > { %p3100_p10 = pneg %p3099_p5  ;;  %p3106_p1 = por %p3105_p12, %p3104_p2 }
  0x4b   : > { %p3107_p3 = pnand %p3106_p1, %p3100_p10 }
  0x4d   : > { %3110 = shalt.err (!%p3107_p3)
}
  0x4e   : > { %s3277_s6 = smov 448   ;;  %s3278_s11 = smov 28  }
  0x4f   : > { %2798 = dma.hbm_to_vmem [thread:$0]  (!%p4035_p8), %s3423_s16, 7168, %s3425_s18, %s3429_s26, %s3277_s6, %s3277_s6, %s3278_s11  }
  0x50   : > { %s2541_s14 = sshll.u32 %s3271_s21, 11  ;;  %s228_s15 = scalar_lea.vmem [#allocation9], %s2432_s13 }
  0x51   : > { %s235_s17 = sshll.u32 %s228_s15, 4  ;;  %s3465_s12 = scalar_lea.hbm %s4010_s3, %s2541_s14  ;;  %s3467_s17 = int_to_ptr.vmem [resolvable:$true] %s235_s17 }
  0x52   : > { %s3111_s24 = scalar_lea.hbm %s3465_s12, 2048  ;;  %s3116_s13 = scalar_lea.hbm %s4010_s3, 4096 }
  0x53   : > { %p3112_p12 = scmp.ne.s32.totalorder %s3465_s12, %s3111_s24  ;;  %p3117_p6 = scmp.lt.u32.totalorder %s3465_s12, %s4010_s3 }
  0x54   : > { %p3118_p4 = scmp.lt.u32.totalorder %s3116_s13, %s3111_s24  ;;  %p3120_p11 = scmp.lt.u32.totalorder %s3111_s24, %s3465_s12 }
  0x55   : > { %p3114_p2 = pnand %p3112_p12, %p3435_p9 }
  0x56   : > { %p3119_p7 = por %p3118_p4, %p3117_p6 }
  0x57   : > { %p3115_p0 = pneg %p3114_p2 }
  0x58   : > { %p3121_p13 = por %p3120_p11, %p3119_p7 }
  0x5a   : > { %p3122_p5 = pnand %p3121_p13, %p3115_p0 }
  0x5c   : > { %3125 = shalt.err (!%p3122_p5)
}
  0x5d   : > { %s3126_s14 = scalar_lea.vmem %s3467_s17, 2048  ;;  %s3279_s15 = smov [#allocation9]  }
  0x5e   : > { %p3127_p10 = scmp.ne.s32.totalorder %s3467_s17, %s3126_s14  ;;  %s3131_s30 = sshll.u32 %s3279_s15, 4  ;;  %s3132_s30 = int_to_ptr.vmem [resolvable:$false] %s3131_s30 }
  0x5f   : > { %s3133_s8 = scalar_lea.vmem %s3132_s30, 4096  ;;  %p3134_p12 = scmp.lt.s32.totalorder %s3467_s17, %s3132_s30 }
  0x60   : > { %p3129_p1 = pnand %p3127_p10, %p3435_p9  ;;  %p3135_p2 = scmp.lt.s32.totalorder %s3133_s8, %s3126_s14 }
  0x62   : > { %p3130_p3 = pneg %p3129_p1  ;;  %p3136_p6 = por %p3135_p2, %p3134_p12 }
  0x64   : > { %p3137_p4 = pnand %p3136_p6, %p3130_p3 }
  0x66   : > { %3140 = shalt.err (!%p3137_p4)
}
  0x67   : > { %s3280_s24 = smov 64   ;;  %s3281_s16 = smov 4  }
  0x68   : > { %2801 = dma.hbm_to_vmem [thread:$0]  (!%p4035_p8), %s3465_s12, 2048, %s3467_s17, %s3429_s26, %s3280_s24, %s3280_s24, %s3281_s16  }
  0x69   : > { %s2766_s18 = smul.u32 12, %s3384_s9  ;;  %s3282_s13 = smov [#allocation6]  }
  0x6a   : > { %s189_s6 = sshll.u32 %s3282_s13, 4  ;;  %s2767_s11 = smul.u32 192, %s3271_s21  ;;  %s190_s6 = int_to_ptr.vmem [resolvable:$true] %s189_s6 }
  0x6b   : > { %s3141_s30 = scalar_lea.hbm %s4008_s1, 512  ;;  %p4037_p7 = scmp.ne.s32.totalorder %s4031_s7, 0 }
  0x6c   : > { %p3142_p0 = scmp.ne.s32.totalorder %s4008_s1, %s3141_s30  ;;  %p3148_p10 = scmp.lt.u32.totalorder %s3141_s30, %s4008_s1 }
  0x6d   : > { %p4038_p11 = pneg %p4037_p7 }
  0x6f   : > { %p3144_p13 = pnand %p3142_p0, %p4038_p11 }
  0x71   : > { %p3145_p5 = pneg %p3144_p13 }
  0x73   : > { %p3150_p1 = pnand %p3148_p10, %p3145_p5 }
  0x75   : > { %3153 = shalt.err (!%p3150_p1)
}
  0x76   : > { %s3154_s21 = scalar_lea.vmem %s190_s6, 512  ;;  %p4039_p12 = pmov %p4038_p11 }
  0x77   : > { %p3155_p3 = scmp.ne.s32.totalorder %s190_s6, %s3154_s21  ;;  %p3162_p4 = scmp.lt.s32.totalorder %s190_s6, %s190_s6 }
  0x78   : > { %p3163_p8 = scmp.lt.s32.totalorder %s3154_s21, %s3154_s21 }
  0x79   : > { %p3157_p2 = pnand %p3155_p3, %p4039_p12 }
  0x7a   : > { %p3164_p9 = por %p3163_p8, %p3162_p4 }
  0x7b   : > { %p3158_p6 = pneg %p3157_p2 }
  0x7d   : > { %p3165_p0 = pnand %p3164_p9, %p3158_p6 }
  0x7f   : > { %3168 = shalt.err (!%p3165_p0)
}
  0x80   : > { %s4040_s9 = smov 8   ;;  %s4041_s25 = smov 128  }
  0x81   : > { %2794 = dma.hbm_to_vmem [thread:$0]  (!%p4037_p7), %s4008_s1, 512, %s190_s6, [#allocation7], %s4041_s25, %s4041_s25, %s4040_s9  }
  0x82   : > { %s3519_s24 = scalar_lea.hbm %s4011_s4, %s2767_s11  ;;  %s249_s16 = scalar_lea.vmem [#allocation10], %s2766_s18 }
  0x83   : > { %s257_s13 = sshll.u32 %s249_s16, 4  ;;  %s3169_s7 = scalar_lea.hbm %s3519_s24, 192  ;;  %s258_s13 = int_to_ptr.vmem [resolvable:$true] %s257_s13 }
  0x84   : > { %p3170_p8 = scmp.ne.s32.totalorder %s3519_s24, %s3169_s7  ;;  %p4042_p9 = scmp.ne.s32.totalorder %s4036_s27, 0 }
  0x85   : > { %s3174_s6 = scalar_lea.hbm %s4011_s4, 384  ;;  %p3175_p7 = scmp.lt.u32.totalorder %s3519_s24, %s4011_s4 }
  0x86   : > { %p3172_p11 = pnand %p3170_p8, %p4042_p9  ;;  %p3176_p5 = scmp.lt.u32.totalorder %s3174_s6, %s3169_s7 }
  0x87   : > { %p3178_p1 = scmp.lt.u32.totalorder %s3169_s7, %s3519_s24 }
  0x88   : > { %p3173_p13 = pneg %p3172_p11  ;;  %p3177_p10 = por %p3176_p5, %p3175_p7 }
  0x8a   : > { %p3179_p3 = por %p3178_p1, %p3177_p10 }
  0x8c   : > { %p3180_p12 = pnand %p3179_p3, %p3173_p13 }
  0x8e   : > { %3183 = shalt.err (!%p3180_p12)
}
  0x8f   : > { %s3184_s18 = scalar_lea.vmem %s258_s13, 192  ;;  %s3283_s11 = smov [#allocation10]  }
  0x90   : > { %p3185_p2 = scmp.ne.s32.totalorder %s258_s13, %s3184_s18  ;;  %s3189_s21 = sshll.u32 %s3283_s11, 4  ;;  %s3190_s21 = int_to_ptr.vmem [resolvable:$false] %s3189_s21 }
  0x91   : > { %s3191_s9 = scalar_lea.vmem %s3190_s21, 384  ;;  %p3192_p0 = scmp.lt.s32.totalorder %s258_s13, %s3190_s21 }
  0x92   : > { %p3187_p6 = pnand %p3185_p2, %p4042_p9  ;;  %p3193_p8 = scmp.lt.s32.totalorder %s3191_s9, %s3184_s18 }
  0x94   : > { %p3188_p4 = pneg %p3187_p6  ;;  %p3194_p11 = por %p3193_p8, %p3192_p0 }
  0x96   : > { %p3195_p5 = pnand %p3194_p11, %p3188_p4 }
  0x98   : > { %3198 = shalt.err (!%p3195_p5)
}
  0x99   : > { %p4043_p7 = scmp.ne.s32.totalorder %s4032_s10, 0  ;;  %p4044_p13 = scmp.ne.s32.totalorder %s4030_s29, 0 }
  0x9a   : > { %p4045_p9 = scmp.eq.s32.totalorder (!%p4044_p13), %s3340_s22, 0 }
  0x9b   : > { %2804 = dma.hbm_to_vmem [thread:$0]  (!%p4043_p7), %s3519_s24, 192, %s258_s13, %s3429_s26  }
  0x9c   : > { %266 = sbr.rel (%p4044_p13) target bundleno = 3431 (0xd67), region = 40 }
  0xa3   : > { %3242 = dma.done.wait (%p4045_p9), [#allocation4], 512   ;;  %p4046_p10 = pmov %p4045_p9 }
  0xa4   : > { %p4047_p1 = pmov %p4045_p9 }
  0xa5   : > { %3244 = vsyncadd (%p4046_p10), [#allocation4], 4294966784 }
  0xa6   : > { %3246 = dma.done.wait (%p4047_p1), [#allocation7], 512   ;;  %p4048_p3 = pmov %p4047_p1 }
  0xa7   : > { %s276_s10 = sand.u32 1, %s3340_s22   ;;  %s278_s26 = sand.u32 1, %s3263_s19  }
  0xa8   : > { %3248 = vsyncadd (%p4048_p3), [#allocation7], 4294966784  ;;  %s2768_s27 = smul.u32 448, %s278_s26  ;;  %s277_s29 = scalar_lea.sflag [#allocation4], %s276_s10 }
  0xa9   : > { %p4049_p12 = scmp.ne.s32.totalorder %s4029_s28, 0 }
  0xaa   : > { %s3551_s25 = scalar_lea.vmem [#allocation8], %s2768_s27 }
  0xab   : > { %3250 = dma.done.wait (%p4049_p12), %s277_s29, 9408  }
  0xac   : > { %3252 = vsyncadd (%p4049_p12), %s277_s29, 4294957888  ;;  %s2439_s0 = sshll.u32 %s278_s26, 7  ;;  %s2769_s2 = smul.u32 12, %s278_s26 }
  0xad   : > { %s3557_s17 = scalar_lea.vmem [#allocation9], %s2439_s0  ;;  %p4050_p2 = scmp.ne.s32.totalorder %s3340_s22, 0 }
  0xae   : > { %s3559_s12 = scalar_lea.vmem [#allocation10], %s2769_s2  ;;  %v335_v0 = vld [vmem:[#allocation3] sm:$0xff] (!%p4050_p2)  ;;  %v336_v1 = vld [vmem:[#allocation3 + $0x8] sm:$0xff] (!%p4050_p2)  ;;  %v337_v2 = vld [vmem:[#allocation3 + $0x10] sm:$0xff] (!%p4050_p2) }
  0xaf   : > { %334 = sbr.rel (%p4050_p2) target bundleno = 182 (0xb6), region = 64  ;;  %339 = vst [vmem:[#allocation2] sm:$0xff] (!%p4050_p2), %v335_v0  ;;  %340 = vst [vmem:[#allocation2 + $0x8] sm:$0xff] (!%p4050_p2), %v336_v1  ;;  %v338_v3 = vld [vmem:[#allocation3 + $0x18] sm:$0xff] (!%p4050_p2) }
  0xb0   : > { %341 = vst [vmem:[#allocation2 + $0x10] sm:$0xff] (!%p4050_p2), %v337_v2  ;;  %342 = vst [vmem:[#allocation2 + $0x18] sm:$0xff] (!%p4050_p2), %v338_v3 }
  0xb6 PF: > { %v2889_v4 = vld [vmem:[%s3551_s25 + $0x4] ss:$28 sps:$4 sm:$0xff]   ;;  %v3284_v6 = vmov 0   ;;  %v2892_v7 = vld [vmem:[%s3551_s25 + $0x3c] ss:$28 sps:$4 sm:$0xff]   ;;  %v344_v15 = vld [vmem:[#allocation2 + $0x8] sm:$0xff]  ;;  %v383_v35 = vlaneseq }
  0xb7   : > { %v2891_v5 = vld [vmem:[%s3551_s25] ss:$28 sps:$4 sm:$0xff]   ;;  %558 = vmatprep.mubr.bf16.mxu0 %v3284_v6  ;;  %526 = vmatprep.subr.bf16.mxu0 %v2889_v4  ;;  %v2894_v8 = vld [vmem:[%s3551_s25 + $0x38] ss:$28 sps:$4 sm:$0xff]   ;;  %v2897_v10 = vld [vmem:[%s3551_s25 + $0x70] ss:$28 sps:$4 sm:$0xff]  }
  0xb8   : > { %527 = vmatpush1.bf16.msra.mxu0 %v2891_v5  ;;  %v2895_v9 = vld [vmem:[%s3551_s25 + $0x74] ss:$28 sps:$4 sm:$0xff]   ;;  %v2898_v11 = vld [vmem:[%s3551_s25 + $0xac] ss:$28 sps:$4 sm:$0xff]   ;;  %v343_v12 = vld [vmem:[#allocation2] sm:$0xff]  ;;  %v3589_v36 = vshrl.u32 %v383_v35, 7 }
  0xb9   : > { %528 = vmatprep.subr.bf16.mxu0 %v2892_v7  ;;  %v2900_v13 = vld [vmem:[%s3551_s25 + $0xa8] ss:$28 sps:$4 sm:$0xff]   ;;  %v347_v16 = vpack.c.bf16 %v344_v15, %v343_v12  ;;  %v2914_v18 = vld [vmem:[%s3551_s25 + $0x40] ss:$28 sps:$4 sm:$0xff]   ;;  %v2915_v21 = vld [vmem:[%s3551_s25 + $0x78] ss:$28 sps:$4 sm:$0xff]  }
  0xba   : > { %v2901_v14 = vld [vmem:[%s3551_s25 + $0xe4] ss:$28 sps:$4 sm:$0xff]   ;;  %v2904_v20 = vld [vmem:[%s3551_s25 + $0x11c] ss:$28 sps:$4 sm:$0xff]   ;;  %v2907_v23 = vld [vmem:[%s3551_s25 + $0x154] ss:$28 sps:$4 sm:$0xff]  }
  0xbb   : > { %v2913_v17 = vld [vmem:[%s3551_s25 + $0x8] ss:$28 sps:$4 sm:$0xff]   ;;  %v2903_v19 = vld [vmem:[%s3551_s25 + $0xe0] ss:$28 sps:$4 sm:$0xff]   ;;  %2648 = vmatprep.mubr.bf16.mxu1 %v347_v16  ;;  %v2906_v22 = vld [vmem:[%s3551_s25 + $0x118] ss:$28 sps:$4 sm:$0xff]  }
  0xbc   : > { %529 = vmatpush1.bf16.msra.mxu0 %v2894_v8  ;;  %2632 = vmatprep.subr.bf16.mxu1 %v2913_v17  ;;  %v2916_v24 = vld [vmem:[%s3551_s25 + $0xb0] ss:$28 sps:$4 sm:$0xff]   ;;  %v2917_v27 = vld [vmem:[%s3551_s25 + $0xe8] ss:$28 sps:$4 sm:$0xff]   ;;  %v2918_v29 = vld [vmem:[%s3551_s25 + $0x120] ss:$28 sps:$4 sm:$0xff]  }
  0xbd   : > { %530 = vmatprep.subr.bf16.mxu0 %v2895_v9  ;;  %2633 = vmatpush3.bf16.msra.mxu1 %v2913_v17  ;;  %v2909_v25 = vld [vmem:[%s3551_s25 + $0x150] ss:$28 sps:$4 sm:$0xff]   ;;  %v2912_v28 = vld [vmem:[%s3551_s25 + $0x188] ss:$28 sps:$4 sm:$0xff]   ;;  %v2919_v30 = vld [vmem:[%s3551_s25 + $0x158] ss:$28 sps:$4 sm:$0xff]  }
  0xbe   : > { %2634 = vmatprep.subr.bf16.mxu1 %v2914_v18  ;;  %v2910_v26 = vld [vmem:[%s3551_s25 + $0x18c] ss:$28 sps:$4 sm:$0xff]   ;;  %v345_v31 = vld [vmem:[#allocation2 + $0x10] sm:$0xff]  ;;  %v346_v32 = vld [vmem:[#allocation2 + $0x18] sm:$0xff]  ;;  %v385_v37 = vsub.s32 0, %v3589_v36  ;;  %v389_v39 = vsub.s32 1, %v3589_v36 }
  0xbf   : > { %v2920_v33 = vld [vmem:[%s3551_s25 + $0x190] ss:$28 sps:$4 sm:$0xff]   ;;  %v348_v34 = vpack.c.bf16 %v346_v32, %v345_v31  ;;  %vm634_vm0 = vcmask 261120   ;;  %s3285_s28 = smov 64   ;;  %s3286_s24 = smov 96   ;;  %v393_v0 = vsub.s32 2, %v3589_v36 }
  0xc0   : > { %531 = vmatpush1.bf16.msra.mxu0 %v2897_v10  ;;  %v381_v38 = vld [vmem:[%s3559_s12] sm:$0x7]  ;;  %s3287_s16 = smov 32   ;;  %vm964_vm1 = vcmask 785408   ;;  %vm959_vm2 = vcmask 523264   ;;  %vm989_vm3 = vcmask 523520  }
  0xc1   : > { %532 = vmatprep.subr.bf16.mxu0 %v2898_v11  ;;  %2635 = vmatpush3.bf16.msra.mxu1 %v2914_v18  ;;  %v386_v40 = vrot.slane %v381_v38, %v385_v37  ;;  %v390_v42 = vrot.slane %v381_v38, %v389_v39  ;;  %v394_v3 = vrot.slane %v381_v38, %v393_v0  ;;  %vm1002_vm4 = vcmask 785920   ;;  %p2527_p6 = scmp.ne.s32.totalorder %s3340_s22, 1 }
  0xc2   : > { %2636 = vmatprep.subr.bf16.mxu1 %v2915_v21  ;;  %vm1015_vm5 = vcmask 1048320  }
  0xc4   : > { %533 = vmatpush1.bf16.msra.mxu0 %v2900_v13 }
  0xc5   : > { %534 = vmatprep.subr.bf16.mxu0 %v2901_v14  ;;  %2637 = vmatpush3.bf16.msra.mxu1 %v2915_v21 }
  0xc6   : > { %2638 = vmatprep.subr.bf16.mxu1 %v2916_v24 }
  0xc8   : > { %535 = vmatpush1.bf16.msra.mxu0 %v2903_v19 }
  0xc9   : > { %536 = vmatprep.subr.bf16.mxu0 %v2904_v20  ;;  %2639 = vmatpush3.bf16.msra.mxu1 %v2916_v24 }
  0xca   : > { %2640 = vmatprep.subr.bf16.mxu1 %v2917_v27 }
  0xcc   : > { %537 = vmatpush1.bf16.msra.mxu0 %v2906_v22 }
  0xcd   : > { %538 = vmatprep.subr.bf16.mxu0 %v2907_v23  ;;  %2641 = vmatpush3.bf16.msra.mxu1 %v2917_v27 }
  0xce   : > { %2642 = vmatprep.subr.bf16.mxu1 %v2918_v29 }
  0xd0   : > { %539 = vmatpush1.bf16.msra.mxu0 %v2909_v25 }
  0xd1   : > { %540 = vmatprep.subr.bf16.mxu0 %v2910_v26  ;;  %2643 = vmatpush3.bf16.msra.mxu1 %v2918_v29 }
  0xd2   : > { %2644 = vmatprep.subr.bf16.mxu1 %v2919_v30 }
  0xd4   : > { %541 = vmatpush1.bf16.msra.mxu0 %v2912_v28 }
  0xd5   : > { %2645 = vmatpush3.bf16.msra.mxu1 %v2919_v30 }
  0xd6   : > { %2646 = vmatprep.subr.bf16.mxu1 %v2920_v33 }
  0xd7   : > { %559 = vmatmul.mubr.bf16.vlgmr.msra.gmra.mrb[0].mxu0 %v347_v16 }
  0xd8   : > { %568 = vmatprep.mubr.bf16.mxu0 %v3284_v6 }
  0xd9   : > { %2647 = vmatpush3.bf16.msra.mxu1 %v2920_v33 }
  0xdc   : > { %2649 = vmatmul.mubr.bf16.vlgmr.msra.gmra.mrb[0].mxu1 %v348_v34 }
  0xdf   : > { %569 = vmatmul.mubr.bf16.gmra.mrb[4].mxu0 %v348_v34 }
 0x1aa   : > { %v560_v41 = vpop.f32.mrb[0].mxu0 }
 0x1ab   : > { %v562_v43 = vpop.f32.mrb[1].mxu0  ;;  %v561_v45 = vadd.f32 %v560_v41, %v386_v40 }
 0x1ac   : > { %v564_v44 = vpop.f32.mrb[2].mxu0  ;;  %v563_v48 = vadd.f32 %v562_v43, %v390_v42 }
 0x1ad   : > { %v565_v46 = vadd.f32 %v564_v44, %v386_v40  ;;  %v566_v47 = vpop.f32.mrb[3].mxu0 }
 0x1ae   : > { %v567_v49 = vadd.f32 %v566_v47, %v390_v42 }
 0x1af   : > { %v628_v50 = vpack.c.bf16 %v565_v46, %v561_v45  ;;  %v2650_v1 = vpop.f32.mrb[0].mxu1 }
 0x1b0   : > { %v630_v51 = vpack.c.bf16 %v567_v49, %v563_v48  ;;  %v613_v2 = vpop.f32.mrb[1].mxu1  ;;  %v622_v7 = vadd.f32 %v2650_v1, %v394_v3 }
 0x1b1   : > { %2656 = vmatprep.mubr.msk.bf16.mxu1 %vm634_vm0, %v628_v50  ;;  %v2651_v4 = vpop.f32.mrb[2].mxu1  ;;  %v614_v8 = vadd.f32 %v613_v2, %v394_v3  ;;  %v971_v2 = vld [vmem:[#allocation6 + $0x10] sm:$0xff] }
 0x1b2   : > { %v570_v52 = vpop.f32.mrb[4].mxu0  ;;  %773 = vrot.lane.b32.xlu1 %v630_v51, %s3285_s28  ;;  %704 = vrot.lane.b32.xlu0 %v630_v51, %s3286_s24  ;;  %v642_v53 = vsel %vm634_vm0, %v630_v51, 0  ;;  %v616_v5 = vpop.f32.mrb[3].mxu1  ;;  %v625_v9 = vadd.f32 %v2651_v4, %v394_v3 }
 0x1b3   : > { %2756 = vmatprep.subr.msk.bf16.mxu1 %vm634_vm0, %v630_v51  ;;  %v572_v54 = vpop.f32.mrb[5].mxu0  ;;  %v571_v56 = vadd.f32 %v570_v52, %v386_v40  ;;  %v617_v10 = vadd.f32 %v616_v5, %v394_v3 }
 0x1b4   : > { %2653 = vmatpush3.bf16.xpose.msra.mxu1 %v642_v53  ;;  %v574_v55 = vpop.f32.mrb[6].mxu0  ;;  %v573_v59 = vadd.f32 %v572_v54, %v390_v42  ;;  %v3617_v11 = vpack.c.bf16 %v625_v9, %v622_v7  ;;  %v972_v9 = vld [vmem:[#allocation6 + $0x18] sm:$0xff] }
 0x1b5   : > { %v575_v57 = vadd.f32 %v574_v55, %v386_v40  ;;  %v576_v58 = vpop.f32.mrb[7].mxu0  ;;  %v3619_v12 = vpack.c.bf16 %v617_v10, %v614_v8 }
 0x1b6   : > { %v577_v60 = vadd.f32 %v576_v58, %v390_v42  ;;  %698 = vrot.lane.b32.xlu1 %v628_v50, %s3286_s24 }
 0x1b7   : > { %v629_v61 = vpack.c.bf16 %v575_v57, %v571_v56 }
 0x1b8   : > { %v631_v62 = vpack.c.bf16 %v577_v60, %v573_v59  ;;  %v969_v59 = vld [vmem:[#allocation6] sm:$0xff] }
 0x1ba   : > { %706 = vrot.lane.b32.xlu0 %v631_v62, %s3286_s24  ;;  %2757 = vmatprep.subr.msk.bf16.mxu1 %vm634_vm0, %v631_v62  ;;  %v645_v63 = vsel %vm634_vm0, %v631_v62, 0 }
 0x1bb   : > { %700 = vrot.lane.b32.xlu1 %v629_v61, %s3286_s24 }
 0x1bc   : > { %2655 = vmatpush3.bf16.xpose.msra.mxu1 %v645_v63 }
 0x1be   : > { %842 = vrot.lane.b32.xlu0 %v630_v51, %s3287_s16 }
 0x1bf   : > { %844 = vrot.lane.b32.xlu1 %v631_v62, %s3287_s16 }
 0x1c2   : > { %775 = vrot.lane.b32.xlu0 %v631_v62, %s3285_s28 }
 0x1c3   : > { %771 = vrot.lane.b32.xlu1 %v629_v61, %s3285_s28  ;;  %2657 = vmatmul.mubr.msk.bf16.vlgmr.msra.gmra.mrb[4].mxu1 %vm634_vm0, %v629_v61 }
 0x1c6   : > { %769 = vrot.lane.b32.xlu0 %v628_v50, %s3285_s28 }
 0x1c7   : > { %840 = vrot.lane.b32.xlu1 %v629_v61, %s3287_s16 }
 0x1ca   : > { %838 = vrot.lane.b32.xlu0 %v628_v50, %s3287_s16 }
 0x224   : > { %v774_v13 = vpop.permute.xlu1 %773  ;;  %v705_v14 = vpop.permute.xlu0 %704 }
 0x225   : > { %2758 = vmatprep.subr.msk.bf16.mxu1 %vm634_vm0, %v705_v14  ;;  %2760 = vmatprep.subr.msk.bf16.mxu0 %vm634_vm0, %v774_v13  ;;  %v715_v15 = vsel %vm634_vm0, %v705_v14, 0  ;;  %v784_v16 = vsel %vm634_vm0, %v774_v13, 0 }
 0x226   : > { %2661 = vmatpush3.bf16.xpose.msra.mxu1 %v715_v15  ;;  %2669 = vmatpush3.bf16.xpose.msra.mxu0 %v784_v16 }
 0x228   : > { %v699_v17 = vpop.permute.xlu1 %698 }
 0x229   : > { %2664 = vmatprep.mubr.msk.bf16.mxu1 %vm634_vm0, %v699_v17 }
 0x22c   : > { %v707_v18 = vpop.permute.xlu0 %706 }
 0x22d   : > { %2759 = vmatprep.subr.msk.bf16.mxu1 %vm634_vm0, %v707_v18  ;;  %v718_v19 = vsel %vm634_vm0, %v707_v18, 0  ;;  %v701_v20 = vpop.permute.xlu1 %700 }
 0x22e   : > { %2663 = vmatpush3.bf16.xpose.msra.mxu1 %v718_v19 }
 0x230   : > { %v843_v21 = vpop.permute.xlu0 %842 }
 0x231   : > { %2762 = vmatprep.subr.msk.bf16.mxu1 %vm634_vm0, %v843_v21  ;;  %v853_v24 = vsel %vm634_vm0, %v843_v21, 0  ;;  %v845_v25 = vpop.permute.xlu1 %844 }
 0x232   : > { %v856_v29 = vsel %vm634_vm0, %v845_v25, 0 }
 0x234   : > { %v776_v22 = vpop.permute.xlu0 %775 }
 0x235   : > { %v787_v23 = vsel %vm634_vm0, %v776_v22, 0  ;;  %2665 = vmatmul.mubr.msk.bf16.vlgmr.msra.gmra.mrb[8].mxu1 %vm634_vm0, %v701_v20  ;;  %2761 = vmatprep.subr.msk.bf16.mxu0 %vm634_vm0, %v776_v22  ;;  %v772_v27 = vpop.permute.xlu1 %771 }
 0x236   : > { %2671 = vmatpush3.bf16.xpose.msra.mxu0 %v787_v23  ;;  %2677 = vmatpush3.bf16.xpose.msra.mxu1 %v853_v24 }
 0x237   : > { %2763 = vmatprep.subr.msk.bf16.mxu1 %vm634_vm0, %v845_v25  ;;  %2684 = vmatprep.subr.bf16.mxu0 %v3619_v12  ;;  %v970_v25 = vld [vmem:[#allocation6 + $0x8] sm:$0xff] }
 0x238   : > { %v770_v26 = vpop.permute.xlu0 %769 }
 0x239   : > { %2672 = vmatprep.mubr.msk.bf16.mxu0 %vm634_vm0, %v770_v26  ;;  %v841_v30 = vpop.permute.xlu1 %840 }
 0x23c   : > { %v839_v28 = vpop.permute.xlu0 %838 }
 0x23d   : > { %2673 = vmatmul.mubr.msk.bf16.vlgmr.msra.gmra.mrb[8].mxu0 %vm634_vm0, %v772_v27  ;;  %2680 = vmatprep.mubr.msk.bf16.mxu1 %vm634_vm0, %v839_v28 }
 0x23e   : > { %2679 = vmatpush3.bf16.xpose.msra.mxu1 %v856_v29  ;;  %2685 = vmatpush3.bf16.msra.mxu0 %v3619_v12 }
 0x23f   : > { %2686 = vmatprep.subr.bf16.mxu0 %v3617_v11 }
 0x242   : > { %2687 = vmatpush3.bf16.msra.mxu0 %v3617_v11 }
 0x245   : > { %2681 = vmatmul.mubr.msk.bf16.vlgmr.msra.gmra.mrb[12].mxu1 %vm634_vm0, %v841_v30 }
 0x296   : > { %v2658_v31 = vpop.f32.mrb[4].mxu1 }
 0x297   : > { %v681_v32 = vpop.f32.mrb[5].mxu1 }
 0x298   : > { %v2659_v33 = vpop.f32.mrb[6].mxu1 }
 0x299   : > { %v3643_v34 = vpop.f32.mrb[7].mxu1 }
 0x308   : > { %v2666_v35 = vpop.f32.mrb[8].mxu1 }
 0x309   : > { %915 = vrot.lane.b32.xlu0 %v2666_v35, %s3287_s16  ;;  %v754_v38 = vpop.f32.mrb[9].mxu1 }
 0x30a   : > { %v2667_v40 = vpop.f32.mrb[10].mxu1 }
 0x30b   : > { %917 = vrot.lane.b32.xlu1 %v2667_v40, %s3287_s16  ;;  %v757_v41 = vpop.f32.mrb[11].mxu1 }
 0x310   : > { %v2674_v42 = vpop.f32.mrb[8].mxu0 }
 0x311   : > { %v823_v43 = vpop.f32.mrb[9].mxu0  ;;  %931 = vrot.lane.b32.xlu0 %v2674_v42, %s3285_s28 }
 0x312   : > { %v2675_v44 = vpop.f32.mrb[10].mxu0 }
 0x313   : > { %v826_v45 = vpop.f32.mrb[11].mxu0  ;;  %933 = vrot.lane.b32.xlu1 %v2675_v44, %s3285_s28 }
 0x315   : > { %911 = vrot.lane.b32.xlu0 %v754_v38, %s3287_s16 }
 0x317   : > { %913 = vrot.lane.b32.xlu1 %v757_v41, %s3287_s16 }
 0x318   : > { %v2682_v46 = vpop.f32.mrb[12].mxu1 }
 0x319   : > { %927 = vrot.lane.b32.xlu0 %v823_v43, %s3285_s28  ;;  %v892_v47 = vpop.f32.mrb[13].mxu1 }
 0x31a   : > { %v2683_v48 = vpop.f32.mrb[14].mxu1 }
 0x31b   : > { %929 = vrot.lane.b32.xlu1 %v826_v45, %s3285_s28  ;;  %v895_v49 = vpop.f32.mrb[15].mxu1 }
 0x31d   : > { %943 = vrot.lane.b32.xlu0 %v892_v47, %s3286_s24 }
 0x31f   : > { %945 = vrot.lane.b32.xlu1 %v895_v49, %s3286_s24 }
 0x321   : > { %947 = vrot.lane.b32.xlu0 %v2682_v46, %s3286_s24 }
 0x323   : > { %949 = vrot.lane.b32.xlu1 %v2683_v48, %s3286_s24 }
 0x37b   : > { %v916_v50 = vpop.permute.xlu0 %915 }
 0x37c   : > { %v957_v1 = vsel %vm634_vm0, %v2658_v31, %v916_v50 }
 0x37d   : > { %v918_v51 = vpop.permute.xlu1 %917 }
 0x37e   : > { %v958_v7 = vsel %vm634_vm0, %v2659_v33, %v918_v51 }
 0x383   : > { %v932_v52 = vpop.permute.xlu0 %931 }
 0x384   : > { %v962_v3 = vsel %vm959_vm2, %v957_v1, %v932_v52 }
 0x385   : > { %v934_v53 = vpop.permute.xlu1 %933 }
 0x386   : > { %v963_v10 = vsel %vm959_vm2, %v958_v7, %v934_v53 }
 0x387   : > { %v912_v54 = vpop.permute.xlu0 %911 }
 0x388   : > { %v955_v58 = vsel %vm634_vm0, %v681_v32, %v912_v54 }
 0x389   : > { %v914_v55 = vpop.permute.xlu1 %913 }
 0x38a   : > { %v956_v21 = vsel %vm634_vm0, %v3643_v34, %v914_v55 }
 0x38b   : > { %v928_v56 = vpop.permute.xlu0 %927 }
 0x38c   : > { %v960_v60 = vsel %vm959_vm2, %v955_v58, %v928_v56 }
 0x38d   : > { %v930_v57 = vpop.permute.xlu1 %929 }
 0x38e   : > { %v961_v22 = vsel %vm959_vm2, %v956_v21, %v930_v57 }
 0x38f   : > { %v944_v61 = vpop.permute.xlu0 %943 }
 0x390   : > { %v965_v62 = vsel %vm964_vm1, %v960_v60, %v944_v61 }
 0x391   : > { %v3660_v63 = vadd.f32 %v969_v59, %v965_v62  ;;  %v946_v0 = vpop.permute.xlu1 %945 }
 0x392   : > { %v966_v26 = vsel %vm964_vm1, %v961_v22, %v946_v0 }
 0x393   : > { %v948_v4 = vpop.permute.xlu0 %947  ;;  %v977_v5 = vsel %vm634_vm0, %v3660_v63, -inf  ;;  %v990_v17 = vsel %vm989_vm3, %v3660_v63, -inf  ;;  %v974_v27 = vadd.f32 %v970_v25, %v966_v26  ;;  %v1003_v28 = vsel %vm1002_vm4, %v3660_v63, -inf }
 0x394   : > { %v967_v8 = vsel %vm964_vm1, %v962_v3, %v948_v4  ;;  %978 = vmax.xlane.f32.xlu0 %v977_v5  ;;  %v1016_v30 = vsel %vm1015_vm5, %v3660_v63, -inf }
 0x395   : > { %v3669_v13 = vadd.f32 %v971_v2, %v967_v8  ;;  %v950_v14 = vpop.permute.xlu1 %949  ;;  %v993_v31 = vsel %vm989_vm3, %v974_v27, -inf  ;;  %v980_v32 = vsel %vm634_vm0, %v974_v27, -inf  ;;  %v1006_v33 = vsel %vm1002_vm4, %v974_v27, -inf }
 0x396   : > { %v968_v15 = vsel %vm964_vm1, %v963_v10, %v950_v14  ;;  %v1019_v35 = vsel %vm1015_vm5, %v974_v27, -inf }
 0x397   : > { %v3672_v16 = vadd.f32 %v972_v9, %v968_v15  ;;  %v983_v18 = vsel %vm634_vm0, %v3669_v13, -inf  ;;  %v996_v19 = vsel %vm989_vm3, %v3669_v13, -inf  ;;  %v1009_v23 = vsel %vm1002_vm4, %v3669_v13, -inf }
 0x398   : > { %991 = vmax.xlane.f32.xlu0 %v990_v17  ;;  %984 = vmax.xlane.f32.xlu1 %v983_v18  ;;  %v1022_v34 = vsel %vm1015_vm5, %v3669_v13, -inf }
 0x399   : > { %v986_v20 = vsel %vm634_vm0, %v3672_v16, -inf  ;;  %v999_v24 = vsel %vm989_vm3, %v3672_v16, -inf  ;;  %v1012_v29 = vsel %vm1002_vm4, %v3672_v16, -inf  ;;  %v1025_v38 = vsel %vm1015_vm5, %v3672_v16, -inf }
 0x39c   : > { %997 = vmax.xlane.f32.xlu1 %v996_v19  ;;  %987 = vmax.xlane.f32.xlu0 %v986_v20 }
 0x3a0   : > { %1010 = vmax.xlane.f32.xlu1 %v1009_v23  ;;  %1000 = vmax.xlane.f32.xlu0 %v999_v24 }
 0x3a4   : > { %1004 = vmax.xlane.f32.xlu1 %v1003_v28  ;;  %1013 = vmax.xlane.f32.xlu0 %v1012_v29 }
 0x3a8   : > { %1017 = vmax.xlane.f32.xlu1 %v1016_v30  ;;  %994 = vmax.xlane.f32.xlu0 %v993_v31 }
 0x3ac   : > { %981 = vmax.xlane.f32.xlu1 %v980_v32  ;;  %1007 = vmax.xlane.f32.xlu0 %v1006_v33 }
 0x3b0   : > { %1023 = vmax.xlane.f32.xlu1 %v1022_v34  ;;  %1020 = vmax.xlane.f32.xlu0 %v1019_v35 }
 0x3b4   : > { %1026 = vmax.xlane.f32.xlu0 %v1025_v38 }
 0x421   : > { %v979_v40 = vpop.xlane.xlu0 %978 }
 0x425   : > { %v992_v41 = vpop.xlane.xlu0 %991  ;;  %v985_v42 = vpop.xlane.xlu1 %984 }
 0x426   : > { %v1028_v53 = vsel %vm634_vm0, %v979_v40, %v992_v41 }
 0x429   : > { %v988_v43 = vpop.xlane.xlu0 %987  ;;  %v998_v44 = vpop.xlane.xlu1 %997 }
 0x42a   : > { %v1030_v54 = vsel %vm634_vm0, %v985_v42, %v998_v44 }
 0x42d   : > { %v1001_v45 = vpop.xlane.xlu0 %1000  ;;  %v1011_v46 = vpop.xlane.xlu1 %1010 }
 0x42e   : > { %v1034_v56 = vsel %vm959_vm2, %v1030_v54, %v1011_v46  ;;  %v1031_v62 = vsel %vm634_vm0, %v988_v43, %v1001_v45 }
 0x431   : > { %v1014_v47 = vpop.xlane.xlu0 %1013  ;;  %v1005_v48 = vpop.xlane.xlu1 %1004 }
 0x432   : > { %v1032_v55 = vsel %vm959_vm2, %v1028_v53, %v1005_v48  ;;  %v1035_v1 = vsel %vm959_vm2, %v1031_v62, %v1014_v47 }
 0x435   : > { %v995_v49 = vpop.xlane.xlu0 %994  ;;  %v1018_v50 = vpop.xlane.xlu1 %1017 }
 0x436   : > { %v1036_v57 = vsel %vm964_vm1, %v1032_v55, %v1018_v50 }
 0x437   : > { %v1040_v0 = vsub.f32 %v3660_v63, %v1036_v57 }
 0x439   : > { %v1008_v51 = vpop.xlane.xlu0 %1007  ;;  %v982_v52 = vpop.xlane.xlu1 %981  ;;  %v1044_v7 = vmul.f32 1.442695, %v1040_v0 }
 0x43a   : > { %v1029_v2 = vsel %vm634_vm0, %v982_v52, %v995_v49 }
 0x43b   : > { %v1033_v8 = vsel %vm959_vm2, %v1029_v2, %v1008_v51 }
 0x43d   : > { %v1021_v58 = vpop.xlane.xlu0 %1020  ;;  %v1024_v59 = vpop.xlane.xlu1 %1023 }
 0x43e   : > { %v1038_v60 = vsel %vm964_vm1, %v1034_v56, %v1024_v59  ;;  %v1037_v10 = vsel %vm964_vm1, %v1033_v8, %v1021_v58 }
 0x43f   : > { %v1042_v61 = vsub.f32 %v3669_v13, %v1038_v60  ;;  %v1041_v13 = vsub.f32 %v974_v27, %v1037_v10 }
 0x441   : > { %v1048_v3 = vmul.f32 1.442695, %v1042_v61  ;;  %v1027_v4 = vpop.xlane.xlu0 %1026  ;;  %v1046_v63 = vmul.f32 1.442695, %v1041_v13 }
 0x442   : > { %v1039_v5 = vsel %vm964_vm1, %v1035_v1, %v1027_v4 }
 0x443   : > { %2969 = vpow2.f32 %v1048_v3  ;;  %v1043_v9 = vsub.f32 %v3672_v16, %v1039_v5 }
 0x444   : > { %2971 = vpow2.f32 %v1044_v7 }
 0x445   : > { %v1050_v14 = vmul.f32 1.442695, %v1043_v9 }
 0x447   : > { %2973 = vpow2.f32 %v1050_v14 }
 0x448   : > { %2975 = vpow2.f32 %v1046_v63 }
 0x44d   : > { %v3715_v15 = vpop.eup %2969 }
 0x44e   : > { %1104 = vrot.lane.b32.xlu0 %v3715_v15, %s3285_s28  ;;  %1076 = vrot.lane.b32.xlu1 %v3715_v15, %s3286_s24  ;;  %v3721_v17 = vpop.eup %2971  ;;  %v1058_v21 = vsel %vm634_vm0, %v3715_v15, 0.0 }
 0x44f   : > { %v1052_v19 = vsel %vm634_vm0, %v3721_v17, 0.0 }
 0x451   : > { %v3727_v16 = vpop.eup %2973 }
 0x452   : > { %1100 = vrot.lane.b32.xlu0 %v3721_v17, %s3285_s28  ;;  %1072 = vrot.lane.b32.xlu1 %v3721_v17, %s3286_s24  ;;  %v3733_v18 = vpop.eup %2975  ;;  %v1061_v20 = vsel %vm634_vm0, %v3727_v16, 0.0 }
 0x453   : > { %v1055_v22 = vsel %vm634_vm0, %v3733_v18, 0.0 }
 0x456   : > { %1128 = vrot.lane.b32.xlu0 %v3721_v17, %s3287_s16  ;;  %1078 = vrot.lane.b32.xlu1 %v3727_v16, %s3286_s24 }
 0x45a   : > { %1074 = vrot.lane.b32.xlu0 %v3733_v18, %s3286_s24  ;;  %1106 = vrot.lane.b32.xlu1 %v3727_v16, %s3285_s28 }
 0x45e   : > { %1132 = vrot.lane.b32.xlu0 %v3715_v15, %s3287_s16  ;;  %1102 = vrot.lane.b32.xlu1 %v3733_v18, %s3285_s28 }
 0x462   : > { %1130 = vrot.lane.b32.xlu1 %v3733_v18, %s3287_s16 }
 0x466   : > { %1134 = vrot.lane.b32.xlu1 %v3727_v16, %s3287_s16 }
 0x47d   : > { %1053 = vadd.xlane.f32.xlu0 %v1052_v19 }
 0x481   : > { %1062 = vadd.xlane.f32.xlu0 %v1061_v20 }
 0x48a   : > { %1059 = vadd.xlane.f32.xlu1 %v1058_v21 }
 0x48e   : > { %1056 = vadd.xlane.f32.xlu1 %v1055_v22 }
 0x4c0   : > { %v1105_v23 = vpop.permute.xlu0 %1104  ;;  %v1077_v24 = vpop.permute.xlu1 %1076 }
 0x4c1   : > { %v1090_v25 = vsel %vm634_vm0, %v1077_v24, 0.0  ;;  %v1118_v29 = vsel %vm634_vm0, %v1105_v23, 0.0 }
 0x4c2   : > { %1091 = vadd.xlane.f32.xlu1 %v1090_v25 }
 0x4c4   : > { %v1101_v26 = vpop.permute.xlu0 %1100  ;;  %v1073_v27 = vpop.permute.xlu1 %1072 }
 0x4c5   : > { %v1084_v28 = vsel %vm634_vm0, %v1073_v27, 0.0  ;;  %v1112_v33 = vsel %vm634_vm0, %v1101_v26, 0.0 }
 0x4c6   : > { %1085 = vadd.xlane.f32.xlu0 %v1084_v28  ;;  %1119 = vadd.xlane.f32.xlu1 %v1118_v29 }
 0x4c8   : > { %v1129_v30 = vpop.permute.xlu0 %1128  ;;  %v1079_v31 = vpop.permute.xlu1 %1078 }
 0x4c9   : > { %v1093_v32 = vsel %vm634_vm0, %v1079_v31, 0.0  ;;  %v1140_v40 = vsel %vm634_vm0, %v1129_v30, 0.0 }
 0x4ca   : > { %1094 = vadd.xlane.f32.xlu0 %v1093_v32  ;;  %1113 = vadd.xlane.f32.xlu1 %v1112_v33 }
 0x4cc   : > { %v1075_v34 = vpop.permute.xlu0 %1074  ;;  %v1107_v35 = vpop.permute.xlu1 %1106 }
 0x4cd   : > { %v1121_v38 = vsel %vm634_vm0, %v1107_v35, 0.0  ;;  %v1087_v43 = vsel %vm634_vm0, %v1075_v34, 0.0 }
 0x4ce   : > { %1122 = vadd.xlane.f32.xlu0 %v1121_v38  ;;  %1141 = vadd.xlane.f32.xlu1 %v1140_v40 }
 0x4d0   : > { %v1133_v41 = vpop.permute.xlu0 %1132  ;;  %v1103_v42 = vpop.permute.xlu1 %1102 }
 0x4d1   : > { %v1146_v44 = vsel %vm634_vm0, %v1133_v41, 0.0  ;;  %v1115_v46 = vsel %vm634_vm0, %v1103_v42, 0.0 }
 0x4d2   : > { %1088 = vadd.xlane.f32.xlu0 %v1087_v43  ;;  %1147 = vadd.xlane.f32.xlu1 %v1146_v44 }
 0x4d4   : > { %v1131_v45 = vpop.permute.xlu1 %1130 }
 0x4d5   : > { %v1143_v47 = vsel %vm634_vm0, %v1131_v45, 0.0 }
 0x4d6   : > { %1116 = vadd.xlane.f32.xlu0 %v1115_v46 }
 0x4d8   : > { %v1135_v48 = vpop.permute.xlu1 %1134 }
 0x4d9   : > { %v1149_v49 = vsel %vm634_vm0, %v1135_v48, 0.0 }
 0x4da   : > { %1144 = vadd.xlane.f32.xlu0 %v1143_v47 }
 0x4de   : > { %1150 = vadd.xlane.f32.xlu0 %v1149_v49 }
 0x4e3   : > { %1237 = vrot.lane.b32.xlu1 %v3619_v12, %s3286_s24 }
 0x4e7   : > { %1302 = vrot.lane.b32.xlu1 %v3619_v12, %s3285_s28 }
 0x4eb   : > { %1367 = vrot.lane.b32.xlu1 %v3619_v12, %s3287_s16 }
 0x4f4   : > { %1239 = vrot.lane.b32.xlu0 %v3617_v11, %s3286_s24 }
 0x4f8   : > { %1304 = vrot.lane.b32.xlu0 %v3617_v11, %s3285_s28 }
 0x50a   : > { %v1054_v51 = vpop.xlane.xlu0 %1053 }
 0x50b   : > { %2977 = vrcp.f32 %v1054_v51 }
 0x50e   : > { %v1063_v53 = vpop.xlane.xlu0 %1062 }
 0x515   : > { %v2978_v1 = vpop.eup %2977 }
 0x517   : > { %v1060_v50 = vpop.xlane.xlu1 %1059 }
 0x518   : > { %2979 = vrcp.f32 %v1060_v50 }
 0x51b   : > { %v1057_v52 = vpop.xlane.xlu1 %1056 }
 0x51c   : > { %2981 = vrcp.f32 %v1057_v52 }
 0x522   : > { %v2980_v2 = vpop.eup %2979 }
 0x526   : > { %v2982_v5 = vpop.eup %2981 }
 0x54f   : > { %v1092_v54 = vpop.xlane.xlu1 %1091 }
 0x550   : > { %2983 = vrcp.f32 %v1092_v54  ;;  %v2921_v54 = vld [vmem:[%s3551_s25 + $0xc] ss:$28 sps:$4 sm:$0xff]  }
 0x553   : > { %v1086_v55 = vpop.xlane.xlu0 %1085  ;;  %v1120_v56 = vpop.xlane.xlu1 %1119 }
 0x554   : > { %2985 = vrcp.f32 %v1086_v55  ;;  %v2922_v55 = vld [vmem:[%s3551_s25 + $0x44] ss:$28 sps:$4 sm:$0xff]  }
 0x555   : > { %2987 = vrcp.f32 %v1120_v56 }
 0x557   : > { %v1095_v57 = vpop.xlane.xlu0 %1094  ;;  %v1114_v58 = vpop.xlane.xlu1 %1113 }
 0x558   : > { %2989 = vrcp.f32 %v1114_v58  ;;  %v2923_v58 = vld [vmem:[%s3551_s25 + $0x7c] ss:$28 sps:$4 sm:$0xff]  }
 0x55a   : > { %v2984_v7 = vpop.eup %2983 }
 0x55b   : > { %v1123_v59 = vpop.xlane.xlu0 %1122  ;;  %v1142_v60 = vpop.xlane.xlu1 %1141  ;;  %v1158_v32 = vsel %vm634_vm0, %v2980_v2, %v2984_v7 }
 0x55c   : > { %2991 = vrcp.f32 %v1142_v60  ;;  %v2925_v60 = vld [vmem:[%s3551_s25 + $0xec] ss:$28 sps:$4 sm:$0xff]  }
 0x55e   : > { %v2986_v8 = vpop.eup %2985 }
 0x55f   : > { %v1089_v12 = vpop.xlane.xlu0 %1088  ;;  %v1148_v61 = vpop.xlane.xlu1 %1147  ;;  %v1156_v21 = vsel %vm634_vm0, %v2978_v1, %v2986_v8 }
 0x560   : > { %2993 = vrcp.f32 %v1089_v12  ;;  %v2988_v9 = vpop.eup %2987  ;;  %v2926_v12 = vld [vmem:[%s3551_s25 + $0x124] ss:$28 sps:$4 sm:$0xff]  }
 0x561   : > { %v1162_v38 = vsel %vm959_vm2, %v1158_v32, %v2988_v9 }
 0x562   : > { %v2990_v13 = vpop.eup %2989 }
 0x563   : > { %v1117_v62 = vpop.xlane.xlu0 %1116  ;;  %v1238_v0 = vpop.permute.xlu1 %1237  ;;  %v1160_v23 = vsel %vm959_vm2, %v1156_v21, %v2990_v13 }
 0x564   : > { %2692 = vmatprep.subr.bf16.mxu1 %v1238_v0  ;;  %2995 = vrcp.f32 %v1117_v62  ;;  %v2927_v62 = vld [vmem:[%s3551_s25 + $0x15c] ss:$28 sps:$4 sm:$0xff]  }
 0x565   : > { %2693 = vmatpush3.bf16.msra.mxu1 %v1238_v0  ;;  %2997 = vrcp.f32 %v1095_v57 }
 0x566   : > { %2999 = vrcp.f32 %v1148_v61  ;;  %v2992_v14 = vpop.eup %2991 }
 0x567   : > { %v1145_v3 = vpop.xlane.xlu0 %1144  ;;  %v1303_v4 = vpop.permute.xlu1 %1302  ;;  %v1164_v27 = vsel %vm964_vm1, %v1160_v23, %v2992_v14 }
 0x568   : > { %3001 = vrcp.f32 %v1145_v3  ;;  %2700 = vmatprep.subr.bf16.mxu0 %v1303_v4  ;;  %v1168_v34 = vmul.f32 %v3721_v17, %v1164_v27 }
 0x569   : > { %3003 = vrcp.f32 %v1123_v59  ;;  %v2924_v59 = vld [vmem:[%s3551_s25 + $0xb4] ss:$28 sps:$4 sm:$0xff]  }
 0x56a   : > { %3005 = vrcp.f32 %v1063_v53  ;;  %v2994_v63 = vpop.eup %2993 }
 0x56b   : > { %v1151_v10 = vpop.xlane.xlu0 %1150  ;;  %v1368_v25 = vpop.permute.xlu1 %1367  ;;  %v1157_v26 = vsel %vm634_vm0, %v2982_v5, %v2994_v63  ;;  %v2928_v5 = vld [vmem:[%s3551_s25 + $0x194] ss:$28 sps:$4 sm:$0xff]  }
 0x56c   : > { %3007 = vrcp.f32 %v1151_v10 }
 0x56e   : > { %v2996_v19 = vpop.eup %2995 }
 0x56f   : > { %v1240_v20 = vpop.permute.xlu0 %1239  ;;  %v2998_v22 = vpop.eup %2997  ;;  %v1161_v29 = vsel %vm959_vm2, %v1157_v26, %v2996_v19 }
 0x570   : > { %2694 = vmatprep.subr.bf16.mxu1 %v1240_v20  ;;  %v3000_v24 = vpop.eup %2999 }
 0x571   : > { %2695 = vmatpush3.bf16.msra.mxu1 %v1240_v20  ;;  %v1166_v41 = vsel %vm964_vm1, %v1162_v38, %v3000_v24 }
 0x572   : > { %v3002_v28 = vpop.eup %3001  ;;  %2708 = vmatprep.subr.bf16.mxu1 %v1368_v25  ;;  %v1170_v17 = vmul.f32 %v3715_v15, %v1166_v41 }
 0x573   : > { %v3004_v30 = vpop.eup %3003  ;;  %v1165_v31 = vsel %vm964_vm1, %v1161_v29, %v3002_v28  ;;  %v1305_v47 = vpop.permute.xlu0 %1304 }
 0x574   : > { %v3006_v33 = vpop.eup %3005  ;;  %v1169_v35 = vmul.f32 %v3733_v18, %v1165_v31 }
 0x575   : > { %v1159_v40 = vsel %vm634_vm0, %v3006_v33, %v2998_v22 }
 0x576   : > { %v3008_v42 = vpop.eup %3007  ;;  %v1172_v43 = vpack.c.bf16 %v1169_v35, %v1168_v34  ;;  %v1163_v44 = vsel %vm959_vm2, %v1159_v40, %v3004_v30 }
 0x577   : > { %v1167_v45 = vsel %vm964_vm1, %v1163_v44, %v3008_v42 }
 0x578   : > { %1231 = vrot.lane.b32.xlu1 %v1172_v43, %s3286_s24  ;;  %2688 = vmatprep.mubr.msk.bf16.mxu0 %vm634_vm0, %v1172_v43  ;;  %v1171_v18 = vmul.f32 %v3727_v16, %v1167_v45 }
 0x57a   : > { %v1173_v46 = vpack.c.bf16 %v1171_v18, %v1170_v17 }
 0x57c   : > { %1369 = vrot.lane.b32.xlu1 %v3617_v11, %s3287_s16  ;;  %1233 = vrot.lane.b32.xlu0 %v1173_v46, %s3286_s24 }
 0x57d   : > { %2689 = vmatmul.mubr.msk.bf16.vlgmr.msra.gmra.mrb[12].mxu0 %vm634_vm0, %v1173_v46 }
 0x57e   : > { %2701 = vmatpush3.bf16.msra.mxu0 %v1303_v4 }
 0x57f   : > { %2702 = vmatprep.subr.bf16.mxu0 %v1305_v47 }
 0x580   : > { %1300 = vrot.lane.b32.xlu1 %v1173_v46, %s3285_s28  ;;  %1298 = vrot.lane.b32.xlu0 %v1172_v43, %s3285_s28 }
 0x582   : > { %2703 = vmatpush3.bf16.msra.mxu0 %v1305_v47 }
 0x583   : > { %2716 = vmatprep.subr.bf16.mxu0 %v2921_v54 }
 0x584   : > { %1365 = vrot.lane.b32.xlu1 %v1173_v46, %s3287_s16  ;;  %1363 = vrot.lane.b32.xlu0 %v1172_v43, %s3287_s16 }
 0x5ea   : > { %v1232_v15 = vpop.permute.xlu1 %1231 }
 0x5eb   : > { %2696 = vmatprep.mubr.msk.bf16.mxu1 %vm634_vm0, %v1232_v15 }
 0x5ee   : > { %v1234_v11 = vpop.permute.xlu0 %1233  ;;  %v1370_v16 = vpop.permute.xlu1 %1369 }
 0x5ef   : > { %2697 = vmatmul.mubr.msk.bf16.vlgmr.msra.gmra.mrb[16].mxu1 %vm634_vm0, %v1234_v11 }
 0x5f0   : > { %2709 = vmatpush3.bf16.msra.mxu1 %v1368_v25 }
 0x5f1   : > { %2710 = vmatprep.subr.bf16.mxu1 %v1370_v16 }
 0x5f2   : > { %v1299_v48 = vpop.permute.xlu0 %1298  ;;  %v1301_v49 = vpop.permute.xlu1 %1300 }
 0x5f3   : > { %2704 = vmatprep.mubr.msk.bf16.mxu0 %vm634_vm0, %v1299_v48 }
 0x5f4   : > { %2711 = vmatpush3.bf16.msra.mxu1 %v1370_v16  ;;  %2705 = vmatmul.mubr.msk.bf16.vlgmr.msra.gmra.mrb[16].mxu0 %vm634_vm0, %v1301_v49 }
 0x5f5   : > { %2717 = vmatpush3.bf16.msra.mxu0 %v2921_v54  ;;  %v2481_v54 = vld [vmem:[%s3559_s12 + $0x3] ss:$0 sm:$0xff] }
 0x5f6   : > { %v1364_v50 = vpop.permute.xlu0 %1363  ;;  %v1366_v51 = vpop.permute.xlu1 %1365  ;;  %2718 = vmatprep.subr.bf16.mxu0 %v2922_v55 }
 0x5f7   : > { %2712 = vmatprep.mubr.msk.bf16.mxu1 %vm634_vm0, %v1364_v50 }
 0x5f8   : > { %2713 = vmatmul.mubr.msk.bf16.vlgmr.msra.gmra.mrb[20].mxu1 %vm634_vm0, %v1366_v51 }
 0x5f9   : > { %1823 = vmatprep.mubr.bf16.mxu1 %v3284_v6  ;;  %2719 = vmatpush3.bf16.msra.mxu0 %v2922_v55 }
 0x5fa   : > { %2720 = vmatprep.subr.bf16.mxu0 %v2923_v58 }
 0x5fd   : > { %2721 = vmatpush3.bf16.msra.mxu0 %v2923_v58 }
 0x5fe   : > { %2722 = vmatprep.subr.bf16.mxu0 %v2924_v59 }
 0x601   : > { %2723 = vmatpush3.bf16.msra.mxu0 %v2924_v59 }
 0x602   : > { %2724 = vmatprep.subr.bf16.mxu0 %v2925_v60 }
 0x605   : > { %2725 = vmatpush3.bf16.msra.mxu0 %v2925_v60 }
 0x606   : > { %2726 = vmatprep.subr.bf16.mxu0 %v2926_v12 }
 0x609   : > { %2727 = vmatpush3.bf16.msra.mxu0 %v2926_v12 }
 0x60a   : > { %2728 = vmatprep.subr.bf16.mxu0 %v2927_v62 }
 0x60d   : > { %2729 = vmatpush3.bf16.msra.mxu0 %v2927_v62 }
 0x60e   : > { %2730 = vmatprep.subr.bf16.mxu0 %v2928_v5 }
 0x611   : > { %2731 = vmatpush3.bf16.msra.mxu0 %v2928_v5  ;;  %v3044_v5 = vld [vmem:[#allocation2 + $0x18] sm:$0xff] }
 0x650   : > { %v3810_v52 = vpop.f32.mrb[12].mxu0 }
 0x651   : > { %v3812_v53 = vpop.f32.mrb[13].mxu0 }
 0x652   : > { %v2691_v56 = vpop.f32.mrb[14].mxu0 }
 0x653   : > { %v3816_v57 = vpop.f32.mrb[15].mxu0 }
 0x6c2   : > { %v2698_v61 = vpop.f32.mrb[16].mxu1 }
 0x6c3   : > { %v1283_v0 = vpop.f32.mrb[17].mxu1 }
 0x6c4   : > { %v2699_v1 = vpop.f32.mrb[18].mxu1 }
 0x6c5   : > { %v2859_v2 = vpack.i.bf16 %v2699_v1, %v2698_v61  ;;  %v1286_v3 = vpop.f32.mrb[19].mxu1  ;;  %v3041_v61 = vld [vmem:[#allocation2] sm:$0xff] }
 0x6c6   : > { %v2869_v4 = vpack.i.bf16 %v1286_v3, %v1283_v0  ;;  %v3042_v0 = vld [vmem:[#allocation2 + $0x8] sm:$0xff]  ;;  %v3043_v3 = vld [vmem:[#allocation2 + $0x10] sm:$0xff] }
 0x6c7   : > { %2860 = vrot.lane.b32.xlu1 %v2859_v2, %s3287_s16  ;;  %v2706_v7 = vpop.f32.mrb[16].mxu0 }
 0x6c8   : > { %2870 = vrot.lane.b32.xlu0 %v2869_v4, %s3287_s16  ;;  %v1348_v8 = vpop.f32.mrb[17].mxu0 }
 0x6c9   : > { %v2707_v9 = vpop.f32.mrb[18].mxu0 }
 0x6ca   : > { %v2864_v10 = vpack.i.bf16 %v2707_v9, %v2706_v7  ;;  %v1351_v13 = vpop.f32.mrb[19].mxu0  ;;  %v2931_v9 = vld [vmem:[%s3551_s25 + $0x14] ss:$28 sps:$4 sm:$0xff]  }
 0x6cb   : > { %v2874_v14 = vpack.i.bf16 %v1351_v13, %v1348_v8  ;;  %v2714_v63 = vpop.f32.mrb[20].mxu1  ;;  %v2929_v8 = vld [vmem:[%s3551_s25 + $0x10] ss:$28 sps:$4 sm:$0xff]   ;;  %1791 = vmatprep.subr.bf16.mxu1 %v2931_v9  ;;  %v2932_v13 = vld [vmem:[%s3551_s25 + $0x48] ss:$28 sps:$4 sm:$0xff]  }
 0x6cc   : > { %2865 = vrot.lane.b32.xlu1 %v2864_v10, %s3285_s28  ;;  %v1413_v19 = vpop.f32.mrb[21].mxu1  ;;  %v2934_v10 = vld [vmem:[%s3551_s25 + $0x4c] ss:$28 sps:$4 sm:$0xff]   ;;  %1792 = vmatpush1.bf16.msra.mxu1 %v2929_v8 }
 0x6cd   : > { %2875 = vrot.lane.b32.xlu0 %v2874_v14, %s3285_s28  ;;  %v2715_v20 = vpop.f32.mrb[22].mxu1  ;;  %1793 = vmatprep.subr.bf16.mxu1 %v2934_v10 }
 0x6ce   : > { %v2884_v21 = vpack.i.bf16 %v2715_v20, %v2714_v63  ;;  %v1416_v22 = vpop.f32.mrb[23].mxu1 }
 0x6cf   : > { %v2879_v23 = vpack.i.bf16 %v1416_v22, %v1413_v19 }
 0x6d0   : > { %2885 = vrot.lane.b32.xlu1 %v2884_v21, %s3286_s24  ;;  %1794 = vmatpush1.bf16.msra.mxu1 %v2932_v13 }
 0x6d1   : > { %2880 = vrot.lane.b32.xlu0 %v2879_v23, %s3286_s24 }
 0x739   : > { %v2861_v24 = vpop.permute.xlu1 %2860 }
 0x73a   : > { %v2871_v25 = vpop.permute.xlu0 %2870  ;;  %v2863_v26 = vunpack.i.h.bf16 %v2861_v24  ;;  %v2862_v27 = vunpack.i.l.bf16 %v2861_v24 }
 0x73b   : > { %v2873_v29 = vunpack.i.h.bf16 %v2871_v25  ;;  %v2872_v30 = vunpack.i.l.bf16 %v2871_v25 }
 0x73c   : > { %v1479_v38 = vsel %vm634_vm0, %v2691_v56, %v2863_v26  ;;  %v1478_v40 = vsel %vm634_vm0, %v3810_v52, %v2862_v27 }
 0x73d   : > { %v1477_v42 = vsel %vm634_vm0, %v3816_v57, %v2873_v29  ;;  %v1476_v43 = vsel %vm634_vm0, %v3812_v53, %v2872_v30 }
 0x73e   : > { %v2866_v28 = vpop.permute.xlu1 %2865 }
 0x73f   : > { %v2876_v31 = vpop.permute.xlu0 %2875  ;;  %v2868_v32 = vunpack.i.h.bf16 %v2866_v28  ;;  %v2867_v33 = vunpack.i.l.bf16 %v2866_v28 }
 0x740   : > { %v2878_v34 = vunpack.i.h.bf16 %v2876_v31  ;;  %v2877_v35 = vunpack.i.l.bf16 %v2876_v31 }
 0x741   : > { %v1482_v18 = vsel %vm959_vm2, %v1478_v40, %v2867_v33  ;;  %v1483_v46 = vsel %vm959_vm2, %v1479_v38, %v2868_v32  ;;  %v2937_v33 = vld [vmem:[%s3551_s25 + $0x84] ss:$28 sps:$4 sm:$0xff]   ;;  %v2938_v38 = vld [vmem:[%s3551_s25 + $0xb8] ss:$28 sps:$4 sm:$0xff]  }
 0x742   : > { %v2886_v41 = vpop.permute.xlu1 %2885  ;;  %v1481_v11 = vsel %vm959_vm2, %v1477_v42, %v2878_v34  ;;  %v1480_v16 = vsel %vm959_vm2, %v1476_v43, %v2877_v35  ;;  %v2935_v34 = vld [vmem:[%s3551_s25 + $0x80] ss:$28 sps:$4 sm:$0xff]   ;;  %1795 = vmatprep.subr.bf16.mxu1 %v2937_v33  ;;  %v2943_v40 = vld [vmem:[%s3551_s25 + $0xf4] ss:$28 sps:$4 sm:$0xff]   ;;  %v2946_v42 = vld [vmem:[%s3551_s25 + $0x12c] ss:$28 sps:$4 sm:$0xff]  }
 0x743   : > { %v2888_v44 = vunpack.i.h.bf16 %v2886_v41  ;;  %v2887_v45 = vunpack.i.l.bf16 %v2886_v41  ;;  %v2881_v17 = vpop.permute.xlu0 %2880  ;;  %1796 = vmatpush1.bf16.msra.mxu1 %v2935_v34  ;;  %v2940_v35 = vld [vmem:[%s3551_s25 + $0xbc] ss:$28 sps:$4 sm:$0xff]   ;;  %v2941_v41 = vld [vmem:[%s3551_s25 + $0xf0] ss:$28 sps:$4 sm:$0xff]   ;;  %v2944_v43 = vld [vmem:[%s3551_s25 + $0x128] ss:$28 sps:$4 sm:$0xff]  }
 0x744   : > { %v2883_v47 = vunpack.i.h.bf16 %v2881_v17  ;;  %v2882_v15 = vunpack.i.l.bf16 %v2881_v17  ;;  %1797 = vmatprep.subr.bf16.mxu1 %v2940_v35  ;;  %v2952_v17 = vld [vmem:[%s3551_s25 + $0x19c] ss:$28 sps:$4 sm:$0xff]  }
 0x745   : > { %v1486_v48 = vsel %vm964_vm1, %v1482_v18, %v2887_v45  ;;  %v1487_v49 = vsel %vm964_vm1, %v1483_v46, %v2888_v44  ;;  %v2947_v44 = vld [vmem:[%s3551_s25 + $0x160] ss:$28 sps:$4 sm:$0xff]   ;;  %v2950_v18 = vld [vmem:[%s3551_s25 + $0x198] ss:$28 sps:$4 sm:$0xff]  }
 0x746   : > { %v1489_v50 = vpack.c.bf16 %v1487_v49, %v1486_v48  ;;  %v1484_v51 = vsel %vm964_vm1, %v1480_v16, %v2882_v15  ;;  %v1485_v52 = vsel %vm964_vm1, %v1481_v11, %v2883_v47  ;;  %v2949_v45 = vld [vmem:[%s3551_s25 + $0x164] ss:$28 sps:$4 sm:$0xff]  }
 0x747   : > { %v1488_v53 = vpack.c.bf16 %v1485_v52, %v1484_v51  ;;  %1798 = vmatpush1.bf16.msra.mxu1 %v2938_v38 }
 0x748   : > { %1799 = vmatprep.subr.bf16.mxu1 %v2943_v40 }
 0x749   : > { %2732 = vmatprep.mubr.bf16.mxu0 %v1488_v53 }
 0x74a   : > { %2733 = vmatmul.mubr.bf16.vlgmr.msra.gmra.mrb[20].mxu0 %v1489_v50 }
 0x74b   : > { %1800 = vmatpush1.bf16.msra.mxu1 %v2941_v41 }
 0x74c   : > { %1801 = vmatprep.subr.bf16.mxu1 %v2946_v42 }
 0x74f   : > { %1802 = vmatpush1.bf16.msra.mxu1 %v2944_v43 }
 0x750   : > { %1803 = vmatprep.subr.bf16.mxu1 %v2949_v45 }
 0x753   : > { %1804 = vmatpush1.bf16.msra.mxu1 %v2947_v44 }
 0x754   : > { %1805 = vmatprep.subr.bf16.mxu1 %v2952_v17 }
 0x757   : > { %1806 = vmatpush1.bf16.msra.mxu1 %v2950_v18 }
 0x81d   : > { %v2734_v55 = vpop.f32.mrb[20].mxu0 }
 0x81e   : > { %v1595_v56 = vpop.f32.mrb[21].mxu0  ;;  %v1604_v60 = vadd.f32 %v2734_v55, %v2481_v54 }
 0x81f   : > { %v1596_v57 = vadd.f32 %v2481_v54, %v1595_v56  ;;  %v2735_v58 = vpop.f32.mrb[22].mxu0  ;;  %v2490_v56 = vld [vmem:[%s3559_s12 + $0x4] ss:$0 sm:$0xff] }
 0x820   : > { %v1598_v59 = vpop.f32.mrb[23].mxu0  ;;  %v1607_v2 = vadd.f32 %v2735_v58, %v2481_v54  ;;  %v1612_v4 = vadd.f32 %v3043_v3, %v1604_v60 }
 0x821   : > { %v1599_v12 = vadd.f32 %v2481_v54, %v1598_v59  ;;  %v1610_v62 = vadd.f32 %v3041_v61, %v1596_v57  ;;  %v2491_v61 = vld [vmem:[%s3559_s12 + $0x5] ss:$0 sm:$0xff] }
 0x822   : > { %v1613_v7 = vadd.f32 %v3044_v5, %v1607_v2 }
 0x823   : > { %1616 = vadd.xlane.f32.xlu0 %v1610_v62  ;;  %v1611_v1 = vadd.f32 %v3042_v0, %v1599_v12 }
 0x825   : > { %1618 = vadd.xlane.f32.xlu1 %v1611_v1 }
 0x827   : > { %1620 = vadd.xlane.f32.xlu0 %v1612_v4 }
 0x82b   : > { %1622 = vadd.xlane.f32.xlu0 %v1613_v7 }
 0x8b0   : > { %v1617_v14 = vpop.xlane.xlu0 %1616 }
 0x8b1   : > { %v1625_v63 = vmul.f32 0.0078125, %v1617_v14  ;;  %v2953_v14 = vld [vmem:[%s3557_s17 + $0x40] sm:$0xff]  }
 0x8b2   : > { %v1619_v19 = vpop.xlane.xlu1 %1618  ;;  %2594 = vmatprep.subr.bf16.mxu0 %v2953_v14 }
 0x8b3   : > { %v1629_v20 = vsub.f32 %v1610_v62, %v1625_v63  ;;  %v1626_v21 = vmul.f32 0.0078125, %v1619_v19  ;;  %v2954_v63 = vld [vmem:[%s3557_s17] sm:$0xff]   ;;  %v2955_v19 = vld [vmem:[%s3557_s17 + $0x48] sm:$0xff]  }
 0x8b4   : > { %v1621_v22 = vpop.xlane.xlu0 %1620  ;;  %2595 = vmatpush3.bf16.msra.mxu0 %v2954_v63 }
 0x8b5   : > { %v1630_v23 = vsub.f32 %v1611_v1, %v1626_v21  ;;  %v1627_v24 = vmul.f32 0.0078125, %v1621_v22  ;;  %v1633_v25 = vmul.f32 %v1629_v20, %v1629_v20  ;;  %2596 = vmatprep.subr.bf16.mxu0 %v2955_v19  ;;  %v2958_v21 = vld [vmem:[%s3557_s17 + $0x10] sm:$0xff]   ;;  %v2959_v22 = vld [vmem:[%s3557_s17 + $0x58] sm:$0xff]  }
 0x8b7   : > { %v1631_v26 = vsub.f32 %v1612_v4, %v1627_v24  ;;  %1637 = vadd.xlane.f32.xlu1 %v1633_v25  ;;  %v1634_v27 = vmul.f32 %v1630_v23, %v1630_v23  ;;  %v2961_v24 = vld [vmem:[%s3557_s17 + $0x60] sm:$0xff]  }
 0x8b8   : > { %v1623_v28 = vpop.xlane.xlu0 %1622  ;;  %v2962_v25 = vld [vmem:[%s3557_s17 + $0x20] sm:$0xff]  }
 0x8b9   : > { %v1628_v29 = vmul.f32 0.0078125, %v1623_v28  ;;  %1639 = vadd.xlane.f32.xlu0 %v1634_v27  ;;  %v1635_v30 = vmul.f32 %v1631_v26, %v1631_v26  ;;  %v2964_v27 = vld [vmem:[%s3557_s17 + $0x28] sm:$0xff]   ;;  %v2965_v28 = vld [vmem:[%s3557_s17 + $0x70] sm:$0xff]  }
 0x8bb   : > { %v1632_v31 = vsub.f32 %v1613_v7, %v1628_v29  ;;  %1641 = vadd.xlane.f32.xlu1 %v1635_v30  ;;  %v2966_v29 = vld [vmem:[%s3557_s17 + $0x30] sm:$0xff]   ;;  %v2967_v30 = vld [vmem:[%s3557_s17 + $0x78] sm:$0xff]  }
 0x8bd   : > { %v1636_v32 = vmul.f32 %v1632_v31, %v1632_v31 }
 0x8bf   : > { %1643 = vadd.xlane.f32.xlu0 %v1636_v32  ;;  %v1699_v32 = vld [vmem:[%s3559_s12 + $0x6] sm:$0x3] }
 0x8c0   : > { %v1704_v33 = vrot.slane %v1699_v32, %v385_v37  ;;  %v1708_v34 = vrot.slane %v1699_v32, %v389_v39 }
 0x944   : > { %v1638_v46 = vpop.xlane.xlu1 %1637 }
 0x945   : > { %v1645_v47 = vmul.f32 0.0078125, %v1638_v46 }
 0x946   : > { %v1640_v15 = vpop.xlane.xlu0 %1639 }
 0x947   : > { %v1649_v11 = vadd.f32 1e-12, %v1645_v47  ;;  %v1646_v16 = vmul.f32 0.0078125, %v1640_v15 }
 0x948   : > { %v1642_v48 = vpop.xlane.xlu1 %1641 }
 0x949   : > { %3009 = vrsqrt.f32 %v1649_v11  ;;  %v1650_v49 = vadd.f32 1e-12, %v1646_v16  ;;  %v1647_v50 = vmul.f32 0.0078125, %v1642_v48 }
 0x94b   : > { %3011 = vrsqrt.f32 %v1650_v49  ;;  %v1651_v51 = vadd.f32 1e-12, %v1647_v50 }
 0x94c   : > { %v1644_v52 = vpop.xlane.xlu0 %1643 }
 0x94d   : > { %3013 = vrsqrt.f32 %v1651_v51  ;;  %v1648_v53 = vmul.f32 0.0078125, %v1644_v52 }
 0x94f   : > { %v1652_v54 = vadd.f32 1e-12, %v1648_v53 }
 0x951   : > { %3015 = vrsqrt.f32 %v1652_v54 }
 0x953   : > { %v3010_v55 = vpop.eup %3009 }
 0x954   : > { %v1657_v57 = vmul.f32 %v3010_v55, %v1629_v20  ;;  %v2956_v20 = vld [vmem:[%s3557_s17 + $0x8] sm:$0xff]  }
 0x955   : > { %v3012_v58 = vpop.eup %3011  ;;  %2597 = vmatpush3.bf16.msra.mxu0 %v2956_v20 }
 0x956   : > { %v1658_v59 = vmul.f32 %v3012_v58, %v1630_v23  ;;  %v1667_v60 = vmul.f32 %v2490_v56, %v1657_v57  ;;  %v2960_v23 = vld [vmem:[%s3557_s17 + $0x18] sm:$0xff]  }
 0x957   : > { %v3014_v12 = vpop.eup %3013 }
 0x958   : > { %v1668_v62 = vmul.f32 %v2490_v56, %v1658_v59  ;;  %v3864_v0 = vadd.f32 %v2491_v61, %v1667_v60  ;;  %v1659_v2 = vmul.f32 %v3014_v12, %v1631_v26  ;;  %v2963_v26 = vld [vmem:[%s3557_s17 + $0x68] sm:$0xff]  }
 0x95a   : > { %v3866_v1 = vadd.f32 %v2491_v61, %v1668_v62  ;;  %v1669_v7 = vmul.f32 %v2490_v56, %v1659_v2 }
 0x95b   : > { %v3016_v3 = vpop.eup %3015 }
 0x95c   : > { %v1681_v4 = vpack.c.bf16 %v3866_v1, %v3864_v0  ;;  %v1660_v5 = vmul.f32 %v3016_v3, %v1632_v31  ;;  %v3873_v10 = vadd.f32 %v2491_v61, %v1669_v7  ;;  %v2968_v31 = vld [vmem:[%s3557_s17 + $0x38] sm:$0xff]  }
 0x95e   : > { %1824 = vmatmul.mubr.bf16.vlgmr.msra.gmra.mrb[24].mxu1 %v1681_v4  ;;  %v1670_v8 = vmul.f32 %v2490_v56, %v1660_v5 }
 0x95f   : > { %1833 = vmatprep.mubr.bf16.mxu1 %v3284_v6  ;;  %v2957_v6 = vld [vmem:[%s3557_s17 + $0x50] sm:$0xff]  }
 0x960   : > { %v3871_v9 = vadd.f32 %v2491_v61, %v1670_v8  ;;  %2598 = vmatprep.subr.bf16.mxu0 %v2957_v6 }
 0x961   : > { %2599 = vmatpush3.bf16.msra.mxu0 %v2958_v21 }
 0x962   : > { %v1682_v13 = vpack.c.bf16 %v3871_v9, %v3873_v10  ;;  %2600 = vmatprep.subr.bf16.mxu0 %v2959_v22 }
 0x965   : > { %2601 = vmatpush3.bf16.msra.mxu0 %v2960_v23 }
 0x966   : > { %1834 = vmatmul.mubr.bf16.gmra.mrb[28].mxu1 %v1682_v13  ;;  %2602 = vmatprep.subr.bf16.mxu0 %v2961_v24 }
 0x969   : > { %2603 = vmatpush3.bf16.msra.mxu0 %v2962_v25 }
 0x96a   : > { %2604 = vmatprep.subr.bf16.mxu0 %v2963_v26 }
 0x96d   : > { %2605 = vmatpush3.bf16.msra.mxu0 %v2964_v27 }
 0x96e   : > { %2606 = vmatprep.subr.bf16.mxu0 %v2965_v28 }
 0x971   : > { %2607 = vmatpush3.bf16.msra.mxu0 %v2966_v29 }
 0x972   : > { %2608 = vmatprep.subr.bf16.mxu0 %v2967_v30 }
 0x975   : > { %2609 = vmatpush3.bf16.msra.mxu0 %v2968_v31 }
 0xa31   : > { %v1825_v35 = vpop.f32.mrb[24].mxu1 }
 0xa32   : > { %v3898_v38 = vadd.f32 %v1825_v35, %v1704_v33  ;;  %v1827_v40 = vpop.f32.mrb[25].mxu1 }
 0xa33   : > { %v3900_v41 = vadd.f32 %v1827_v40, %v1708_v34  ;;  %v1829_v42 = vpop.f32.mrb[26].mxu1 }
 0xa34   : > { %v1844_v43 = vmul.f32 %v3898_v38, %v3898_v38  ;;  %v3904_v44 = vadd.f32 %v1829_v42, %v1704_v33  ;;  %v1831_v45 = vpop.f32.mrb[27].mxu1 }
 0xa35   : > { %v1845_v17 = vmul.f32 %v3900_v41, %v3900_v41  ;;  %v3908_v37 = vadd.f32 %v1831_v45, %v1708_v34 }
 0xa36   : > { %v1852_v36 = vmul.f32 %v1844_v43, %v3898_v38  ;;  %v1846_v39 = vmul.f32 %v3904_v44, %v3904_v44 }
 0xa37   : > { %v1853_v18 = vmul.f32 %v1845_v17, %v3900_v41  ;;  %v1847_v46 = vmul.f32 %v3908_v37, %v3908_v37 }
 0xa38   : > { %v1860_v47 = vmul.f32 0.044715, %v1852_v36  ;;  %v1854_v15 = vmul.f32 %v1846_v39, %v3904_v44 }
 0xa39   : > { %v1861_v11 = vmul.f32 0.044715, %v1853_v18  ;;  %v1855_v16 = vmul.f32 %v1847_v46, %v3908_v37  ;;  %v1835_v48 = vpop.f32.mrb[28].mxu1 }
 0xa3a   : > { %v1868_v49 = vadd.f32 %v1860_v47, %v3898_v38  ;;  %v1862_v50 = vmul.f32 0.044715, %v1854_v15  ;;  %v3919_v51 = vadd.f32 %v1835_v48, %v1704_v33  ;;  %v1837_v52 = vpop.f32.mrb[29].mxu1 }
 0xa3b   : > { %v1869_v53 = vadd.f32 %v1861_v11, %v3900_v41  ;;  %v1863_v54 = vmul.f32 0.044715, %v1855_v16  ;;  %v3922_v55 = vadd.f32 %v1837_v52, %v1708_v34  ;;  %v1839_v56 = vpop.f32.mrb[30].mxu1 }
 0xa3c   : > { %v1876_v57 = vmul.f32 0.7978846, %v1868_v49  ;;  %v1870_v58 = vadd.f32 %v1862_v50, %v3904_v44  ;;  %v1848_v59 = vmul.f32 %v3919_v51, %v3919_v51  ;;  %v3927_v60 = vadd.f32 %v1839_v56, %v1704_v33  ;;  %v1841_v12 = vpop.f32.mrb[31].mxu1 }
 0xa3d   : > { %v1877_v61 = vmul.f32 0.7978846, %v1869_v53  ;;  %v1871_v62 = vadd.f32 %v1863_v54, %v3908_v37  ;;  %v1849_v2 = vmul.f32 %v3922_v55, %v3922_v55  ;;  %v3932_v3 = vadd.f32 %v1841_v12, %v1708_v34 }
 0xa3e   : > { %3017 = vtanh.f32 %v1876_v57  ;;  %v1878_v4 = vmul.f32 0.7978846, %v1870_v58  ;;  %v1856_v5 = vmul.f32 %v1848_v59, %v3919_v51  ;;  %v1850_v7 = vmul.f32 %v3927_v60, %v3927_v60 }
 0xa3f   : > { %3019 = vtanh.f32 %v1877_v61  ;;  %v1879_v8 = vmul.f32 0.7978846, %v1871_v62  ;;  %v1857_v13 = vmul.f32 %v1849_v2, %v3922_v55  ;;  %v1851_v14 = vmul.f32 %v3932_v3, %v3932_v3 }
 0xa40   : > { %3021 = vtanh.f32 %v1878_v4  ;;  %v1864_v63 = vmul.f32 0.044715, %v1856_v5  ;;  %v1858_v19 = vmul.f32 %v1850_v7, %v3927_v60  ;;  %v2508_v5 = vld [vmem:[%s3559_s12 + $0x8] ss:$0 sm:$0xff] }
 0xa41   : > { %3023 = vtanh.f32 %v1879_v8  ;;  %v1865_v20 = vmul.f32 0.044715, %v1857_v13  ;;  %v1859_v6 = vmul.f32 %v1851_v14, %v3932_v3 }
 0xa42   : > { %v1872_v21 = vadd.f32 %v1864_v63, %v3919_v51  ;;  %v1866_v22 = vmul.f32 0.044715, %v1858_v19 }
 0xa43   : > { %v1873_v23 = vadd.f32 %v1865_v20, %v3922_v55  ;;  %v1867_v24 = vmul.f32 0.044715, %v1859_v6 }
 0xa44   : > { %v1880_v25 = vmul.f32 0.7978846, %v1872_v21  ;;  %v1874_v26 = vadd.f32 %v1866_v22, %v3927_v60 }
 0xa45   : > { %v1881_v27 = vmul.f32 0.7978846, %v1873_v23  ;;  %v1875_v28 = vadd.f32 %v1867_v24, %v3932_v3 }
 0xa46   : > { %3025 = vtanh.f32 %v1880_v25  ;;  %v1882_v29 = vmul.f32 0.7978846, %v1874_v26 }
 0xa47   : > { %3027 = vtanh.f32 %v1881_v27  ;;  %v1883_v30 = vmul.f32 0.7978846, %v1875_v28 }
 0xa48   : > { %v3018_v31 = vpop.eup %3017  ;;  %3029 = vtanh.f32 %v1882_v29 }
 0xa49   : > { %v3020_v32 = vpop.eup %3019  ;;  %v1892_v33 = vadd.f32 1.0, %v3018_v31  ;;  %3031 = vtanh.f32 %v1883_v30 }
 0xa4a   : > { %v3022_v34 = vpop.eup %3021  ;;  %v1893_v35 = vadd.f32 1.0, %v3020_v32 }
 0xa4b   : > { %v3024_v40 = vpop.eup %3023  ;;  %v1900_v42 = vmul.f32 0.5, %v1892_v33  ;;  %v1894_v43 = vadd.f32 1.0, %v3022_v34 }
 0xa4c   : > { %v1895_v45 = vadd.f32 1.0, %v3024_v40  ;;  %v1901_v17 = vmul.f32 0.5, %v1893_v35 }
 0xa4d   : > { %v1902_v36 = vmul.f32 0.5, %v1894_v43  ;;  %v1908_v18 = vmul.f32 %v1900_v42, %v3898_v38 }
 0xa4e   : > { %v1903_v39 = vmul.f32 0.5, %v1895_v45  ;;  %v1909_v15 = vmul.f32 %v1901_v17, %v3900_v41 }
 0xa4f   : > { %v1910_v46 = vmul.f32 %v1902_v36, %v3904_v44 }
 0xa50   : > { %v3026_v47 = vpop.eup %3025  ;;  %v1911_v11 = vmul.f32 %v1903_v39, %v3908_v37 }
 0xa51   : > { %v3028_v16 = vpop.eup %3027  ;;  %v1916_v48 = vpack.c.bf16 %v1910_v46, %v1908_v18  ;;  %v1896_v49 = vadd.f32 1.0, %v3026_v47 }
 0xa52   : > { %v3030_v50 = vpop.eup %3029  ;;  %v1917_v52 = vpack.c.bf16 %v1911_v11, %v1909_v15  ;;  %v1897_v53 = vadd.f32 1.0, %v3028_v16 }
 0xa53   : > { %v3032_v54 = vpop.eup %3031  ;;  %v1898_v56 = vadd.f32 1.0, %v3030_v50  ;;  %v1904_v57 = vmul.f32 0.5, %v1896_v49 }
 0xa54   : > { %2087 = vmatprep.mubr.bf16.mxu0 %v1917_v52  ;;  %v1899_v58 = vadd.f32 1.0, %v3032_v54  ;;  %v1905_v38 = vmul.f32 0.5, %v1897_v53  ;;  %v2525_v53 = vld [vmem:[%s3559_s12 + $0x9] ss:$0 sm:$0xff] }
 0xa55   : > { %2088 = vmatmul.mubr.bf16.vlgmr.msra.gmra.mrb[24].mxu0 %v1916_v48  ;;  %v1906_v44 = vmul.f32 0.5, %v1898_v56  ;;  %v1912_v41 = vmul.f32 %v1904_v57, %v3919_v51  ;;  %v2526_v57 = vld [vmem:[%s3559_s12 + $0xa] ss:$0 sm:$0xff] }
 0xa56   : > { %v1907_v59 = vmul.f32 0.5, %v1899_v58  ;;  %v1913_v12 = vmul.f32 %v1905_v38, %v3922_v55 }
 0xa57   : > { %v1914_v37 = vmul.f32 %v1906_v44, %v3927_v60 }
 0xa58   : > { %v1915_v61 = vmul.f32 %v1907_v59, %v3932_v3 }
 0xa59   : > { %v1918_v62 = vpack.c.bf16 %v1914_v37, %v1912_v41 }
 0xa5a   : > { %v1919_v2 = vpack.c.bf16 %v1915_v61, %v1913_v12 }
 0xa5c   : > { %2095 = vmatprep.mubr.bf16.mxu0 %v1919_v2 }
 0xa5d   : > { %2096 = vmatmul.mubr.bf16.gmra.mrb[28].mxu0 %v1918_v62 }
 0xb28   : > { %v2610_v4 = vpop.f32.mrb[24].mxu0 }
 0xb29   : > { %v2611_v7 = vpop.f32.mrb[25].mxu0 }
 0xb2a   : > { %v2612_v8 = vadd.f32 %v2611_v7, %v2610_v4  ;;  %v2613_v13 = vpop.f32.mrb[26].mxu0 }
 0xb2b   : > { %v2614_v14 = vpop.f32.mrb[27].mxu0 }
 0xb2c   : > { %v2090_v63 = vadd.f32 %v2612_v8, %v2508_v5  ;;  %v2615_v19 = vadd.f32 %v2614_v14, %v2613_v13  ;;  %v3045_v8 = vld [vmem:[%s3551_s25 + $0x18] ss:$28 sps:$4 sm:$0xff] (!%p2527_p6)   ;;  %v3046_v14 = vld [vmem:[%s3551_s25 + $0x50] ss:$28 sps:$4 sm:$0xff] (!%p2527_p6)  }
 0xb2d   : > { %2736 = vmatprep.subr.bf16.mxu0 (!%p2527_p6), %v3045_v8 }
 0xb2e   : > { %v2093_v20 = vadd.f32 %v2615_v19, %v2508_v5  ;;  %v2104_v51 = vadd.f32 %v2090_v63, %v3864_v0  ;;  %2737 = vmatpush3.bf16.msra.mxu0 (!%p2527_p6), %v3045_v8  ;;  %v3047_v63 = vld [vmem:[%s3551_s25 + $0x88] ss:$28 sps:$4 sm:$0xff] (!%p2527_p6)   ;;  %v3048_v19 = vld [vmem:[%s3551_s25 + $0xc0] ss:$28 sps:$4 sm:$0xff] (!%p2527_p6)  }
 0xb2f   : > { %2738 = vmatprep.subr.bf16.mxu0 (!%p2527_p6), %v3046_v14 }
 0xb30   : > { %2110 = vadd.xlane.f32.xlu1 %v2104_v51  ;;  %v2616_v60 = vpop.f32.mrb[28].mxu0  ;;  %v2105_v55 = vadd.f32 %v2093_v20, %v3866_v1  ;;  %v3049_v20 = vld [vmem:[%s3551_s25 + $0xf8] ss:$28 sps:$4 sm:$0xff] (!%p2527_p6)  }
 0xb31   : > { %v2617_v3 = vpop.f32.mrb[29].mxu0 }
 0xb32   : > { %v2618_v6 = vadd.f32 %v2617_v3, %v2616_v60  ;;  %2112 = vadd.xlane.f32.xlu0 %v2105_v55  ;;  %v2619_v21 = vpop.f32.mrb[30].mxu0  ;;  %2739 = vmatpush3.bf16.msra.mxu0 (!%p2527_p6), %v3046_v14  ;;  %v3051_v60 = vld [vmem:[%s3551_s25 + $0x168] ss:$28 sps:$4 sm:$0xff] (!%p2527_p6)  }
 0xb33   : > { %v2620_v22 = vpop.f32.mrb[31].mxu0  ;;  %2740 = vmatprep.subr.bf16.mxu0 (!%p2527_p6), %v3047_v63 }
 0xb34   : > { %v2098_v23 = vadd.f32 %v2618_v6, %v2508_v5  ;;  %v2621_v24 = vadd.f32 %v2620_v22, %v2619_v21  ;;  %v2528_v6 = vld [vmem:[%s3559_s12 + $0xb] ss:$0 sm:$0xff] (!%p2527_p6) }
 0xb36   : > { %v2101_v25 = vadd.f32 %v2621_v24, %v2508_v5  ;;  %v2106_v26 = vadd.f32 %v2098_v23, %v3873_v10  ;;  %2741 = vmatpush3.bf16.msra.mxu0 (!%p2527_p6), %v3047_v63 }
 0xb37   : > { %2742 = vmatprep.subr.bf16.mxu0 (!%p2527_p6), %v3048_v19 }
 0xb38   : > { %2114 = vadd.xlane.f32.xlu1 %v2106_v26  ;;  %v2107_v27 = vadd.f32 %v2101_v25, %v3871_v9 }
 0xb3a   : > { %2116 = vadd.xlane.f32.xlu0 %v2107_v27  ;;  %2743 = vmatpush3.bf16.msra.mxu0 (!%p2527_p6), %v3048_v19 }
 0xb3b   : > { %2744 = vmatprep.subr.bf16.mxu0 (!%p2527_p6), %v3049_v20 }
 0xb3e   : > { %2745 = vmatpush3.bf16.msra.mxu0 (!%p2527_p6), %v3049_v20 }
 0xbbd   : > { %v2111_v28 = vpop.xlane.xlu1 %2110 }
 0xbbe   : > { %v2118_v0 = vmul.f32 0.0078125, %v2111_v28 }
 0xbbf   : > { %v2113_v29 = vpop.xlane.xlu0 %2112 }
 0xbc0   : > { %v2122_v30 = vsub.f32 %v2104_v51, %v2118_v0  ;;  %v2119_v31 = vmul.f32 0.0078125, %v2113_v29  ;;  %v3050_v51 = vld [vmem:[%s3551_s25 + $0x130] ss:$28 sps:$4 sm:$0xff] (!%p2527_p6)  }
 0xbc1   : > { %2746 = vmatprep.subr.bf16.mxu0 (!%p2527_p6), %v3050_v51 }
 0xbc2   : > { %v2123_v1 = vsub.f32 %v2105_v55, %v2119_v31  ;;  %v2126_v32 = vmul.f32 %v2122_v30, %v2122_v30  ;;  %2747 = vmatpush3.bf16.msra.mxu0 (!%p2527_p6), %v3050_v51  ;;  %v3052_v55 = vld [vmem:[%s3551_s25 + $0x1a0] ss:$28 sps:$4 sm:$0xff] (!%p2527_p6)  }
 0xbc3   : > { %2748 = vmatprep.subr.bf16.mxu0 (!%p2527_p6), %v3051_v60 }
 0xbc4   : > { %2130 = vadd.xlane.f32.xlu1 %v2126_v32  ;;  %v2127_v33 = vmul.f32 %v2123_v1, %v2123_v1 }
 0xbc5   : > { %v2115_v34 = vpop.xlane.xlu1 %2114 }
 0xbc6   : > { %v2120_v35 = vmul.f32 0.0078125, %v2115_v34  ;;  %2132 = vadd.xlane.f32.xlu0 %v2127_v33  ;;  %2749 = vmatpush3.bf16.msra.mxu0 (!%p2527_p6), %v3051_v60 }
 0xbc7   : > { %v2117_v40 = vpop.xlane.xlu0 %2116  ;;  %2750 = vmatprep.subr.bf16.mxu0 (!%p2527_p6), %v3052_v55 }
 0xbc8   : > { %v2124_v42 = vsub.f32 %v2106_v26, %v2120_v35  ;;  %v2121_v43 = vmul.f32 0.0078125, %v2117_v40 }
 0xbca   : > { %v2125_v10 = vsub.f32 %v2107_v27, %v2121_v43  ;;  %v2128_v45 = vmul.f32 %v2124_v42, %v2124_v42  ;;  %2751 = vmatpush3.bf16.msra.mxu0 (!%p2527_p6), %v3052_v55 }
 0xbcc   : > { %2134 = vadd.xlane.f32.xlu1 %v2128_v45  ;;  %v2129_v9 = vmul.f32 %v2125_v10, %v2125_v10 }
 0xbce   : > { %2136 = vadd.xlane.f32.xlu0 %v2129_v9 }
 0xc51   : > { %v2131_v17 = vpop.xlane.xlu1 %2130 }
 0xc52   : > { %v2138_v36 = vmul.f32 0.0078125, %v2131_v17 }
 0xc53   : > { %v2133_v39 = vpop.xlane.xlu0 %2132 }
 0xc54   : > { %v2142_v18 = vadd.f32 1e-12, %v2138_v36  ;;  %v2139_v46 = vmul.f32 0.0078125, %v2133_v39 }
 0xc56   : > { %3033 = vrsqrt.f32 %v2142_v18  ;;  %v2143_v47 = vadd.f32 1e-12, %v2139_v46 }
 0xc58   : > { %3035 = vrsqrt.f32 %v2143_v47 }
 0xc59   : > { %v2135_v15 = vpop.xlane.xlu1 %2134 }
 0xc5a   : > { %v2140_v11 = vmul.f32 0.0078125, %v2135_v15 }
 0xc5b   : > { %v2137_v16 = vpop.xlane.xlu0 %2136 }
 0xc5c   : > { %v2144_v48 = vadd.f32 1e-12, %v2140_v11  ;;  %v2141_v49 = vmul.f32 0.0078125, %v2137_v16 }
 0xc5e   : > { %3037 = vrsqrt.f32 %v2144_v48  ;;  %v2145_v50 = vadd.f32 1e-12, %v2141_v49 }
 0xc60   : > { %v3034_v52 = vpop.eup %3033  ;;  %3039 = vrsqrt.f32 %v2145_v50 }
 0xc61   : > { %v2150_v54 = vmul.f32 %v3034_v52, %v2122_v30 }
 0xc62   : > { %v3036_v56 = vpop.eup %3035 }
 0xc63   : > { %v2160_v58 = vmul.f32 %v2525_v53, %v2150_v54  ;;  %v2151_v38 = vmul.f32 %v3036_v56, %v2123_v1 }
 0xc65   : > { %v2170_v44 = vadd.f32 %v2526_v57, %v2160_v58  ;;  %v2161_v59 = vmul.f32 %v2525_v53, %v2151_v38 }
 0xc67   : > { %2174 = vst [vmem:[#allocation2] sm:$0xff] %v2170_v44  ;;  %v2171_v41 = vadd.f32 %v2526_v57, %v2161_v59 }
 0xc68   : > { %v3038_v37 = vpop.eup %3037 }
 0xc69   : > { %2175 = vst [vmem:[#allocation2 + $0x8] sm:$0xff] %v2171_v41  ;;  %v2152_v12 = vmul.f32 %v3038_v37, %v2124_v42  ;;  %v2182_v13 = vpack.c.bf16 (!%p2527_p6), %v2171_v41, %v2170_v44 }
 0xc6a   : > { %v3040_v61 = vpop.eup %3039 }
 0xc6b   : > { %v2162_v62 = vmul.f32 %v2525_v53, %v2152_v12  ;;  %v2153_v2 = vmul.f32 %v3040_v61, %v2125_v10  ;;  %2181 = sbr.rel (%p2527_p6) target bundleno = 3405 (0xd4d), region = 68  ;;  %2752 = vmatprep.mubr.bf16.mxu0 (!%p2527_p6), %v2182_v13 }
 0xc6d   : > { %v2172_v4 = vadd.f32 %v2526_v57, %v2162_v62  ;;  %v2163_v5 = vmul.f32 %v2525_v53, %v2153_v2 }
 0xc6f   : > { %2176 = vst [vmem:[#allocation2 + $0x10] sm:$0xff] %v2172_v4  ;;  %v2173_v7 = vadd.f32 %v2526_v57, %v2163_v5 }
 0xc71   : > { %2177 = vst [vmem:[#allocation2 + $0x18] sm:$0xff] %v2173_v7  ;;  %v2183_v3 = vpack.c.bf16 (!%p2527_p6), %v2173_v7, %v2172_v4 }
 0xc73   : > { %2753 = vmatmul.mubr.bf16.vlgmr.msra.gmra.mrb[0].mxu0 %v2183_v3 }
 0xd46   : > { %v2754_v21 = vpop.f32.mrb[0].mxu0 }
 0xd47   : > { %v2298_v22 = vadd.f32 %v2754_v21, %v2528_v6  ;;  %v2289_v23 = vpop.f32.mrb[1].mxu0 }
 0xd48   : > { %v2290_v24 = vadd.f32 %v2528_v6, %v2289_v23  ;;  %v2755_v25 = vpop.f32.mrb[2].mxu0 }
 0xd49   : > { %2306 = vst [vmem:[#allocation11 + $0x10] sm:$0xff] %v2298_v22  ;;  %v2301_v26 = vadd.f32 %v2755_v25, %v2528_v6  ;;  %v2292_v27 = vpop.f32.mrb[3].mxu0 }
 0xd4a   : > { %2304 = vst [vmem:[#allocation11] sm:$0xff] %v2290_v24  ;;  %v2293_v28 = vadd.f32 %v2528_v6, %v2292_v27 }
 0xd4b   : > { %2307 = vst [vmem:[#allocation11 + $0x18] sm:$0xff] %v2301_v26 }
 0xd4c   : > { %2305 = vst [vmem:[#allocation11 + $0x8] sm:$0xff] %v2293_v28 }
 0xd4d PF: > { %p2810_p4 = scmp.eq.s32.totalorder %s3340_s22, 1  ;;  %s3288_s13 = smov [#allocation11]  }
 0xd4e   : > { %s2314_s7 = sshll.u32 %s3288_s13, 4  ;;  %s2315_s7 = int_to_ptr.vmem [resolvable:$true] %s2314_s7 }
 0xd4f   : > { %s3199_s14 = scalar_lea.vmem %s2315_s7, 512  ;;  %p3206_p5 = scmp.lt.s32.totalorder %s2315_s7, %s2315_s7 }
 0xd50   : > { %p3200_p0 = scmp.ne.s32.totalorder %s2315_s7, %s3199_s14  ;;  %p3207_p7 = scmp.lt.s32.totalorder %s3199_s14, %s3199_s14 }
 0xd52   : > { %p3201_p8 = pnand %p3200_p0, %p2810_p4  ;;  %p3208_p13 = por %p3207_p7, %p3206_p5 }
 0xd54   : > { %p3202_p11 = pneg %p3201_p8 }
 0xd56   : > { %p3209_p9 = pnand %p3208_p13, %p3202_p11 }
 0xd58   : > { %3212 = shalt.err (!%p3209_p9)
}
 0xd59   : > { %s3213_s30 = scalar_lea.hbm %s4012_s5, 512 }
 0xd5a   : > { %p3214_p10 = scmp.ne.s32.totalorder %s4012_s5, %s3213_s30  ;;  %p3219_p12 = scmp.lt.u32.totalorder %s3213_s30, %s4012_s5 }
 0xd5c   : > { %p3215_p1 = pnand %p3214_p10, %p2810_p4 }
 0xd5e   : > { %p3216_p3 = pneg %p3215_p1 }
 0xd60   : > { %p3221_p2 = pnand %p3219_p12, %p3216_p3 }
 0xd62   : > { %3224 = shalt.err (!%p3221_p2)
}
 0xd63   : > { %s3289_s9 = smov 128   ;;  %s3290_s10 = smov 8  }
 0xd64   : > { %2785 = dma.vmem_to_hbm [thread:$0]  (%p2810_p4), %s2315_s7, 512, %s4012_s5, [#allocation5], %s3289_s9, %s3289_s9, %s3290_s10  }
 0xd65   : > { %3254 = dma.done.wait (%p2810_p4), [#allocation5], 512  }
 0xd66   : > { %3256 = vsyncadd (%p2810_p4), [#allocation5], 4294966784 }
 0xd67 PF: > { %s4051_s29 = sld [smem:[#allocation16_spill]]  ;;  %p15_p6 = scmp.ge.s32.totalorder %s3343_s23, 4  }
 0xd68   : > { %s4052_s18 = smov %s3263_s19  ;;  %s4053_s19 = smov %s3267_s20 }
 0xd69   : > { %s4055_s21 = smov %s3343_s23  ;;  %17 = sbr.rel (!%p15_p6) target bundleno = 7 (0x7), region = 114 }
 0xd6d   : > { %s4054_s20 = smov %s4051_s29 }
 0xd70   :  { %2330 = vsyncpa [#allocation4], 1 }
 0xd71   :  { %2332 = vsyncpa [#allocation4 + $0x1], 1 }
 0xd72   :  { %2333 = vsyncpa [#allocation7], 1 }
 0xd73   :  { %2334 = vsyncpa [#allocation5], 1 }
 0xd74   :  { %2336 = vsyncpa [#allocation5 + $0x1], 1 }

</bundles_post_ra>
